<compile_context>
chip_gen: v6e
topology: v6e:2x2x1
jax: 0.10.0
libtpu: 0.0.40
codegen_flags: <defaults>
</compile_context>

<pallas_src>
import jax
import jax.numpy as jnp
from jax.experimental import pallas as pl
from jax.experimental.pallas import tpu as pltpu


# ----------------------------------------------------------------------------
# Small helpers
# ----------------------------------------------------------------------------
def _round_up(x, m):
    return (x + m - 1) // m * m


def _padded_rows(rows, tile):
    """Pad row count to a multiple of `tile`; keep the grid length even (>1)."""
    mp = _round_up(max(rows, 1), tile)
    steps = mp // tile
    if steps > 1 and steps % 2 == 1:
        mp += tile  # even-length "parallel" grid -> shards across v7x's 2 TCs
    return mp


# ----------------------------------------------------------------------------
# Pallas kernels
# ----------------------------------------------------------------------------
def conv_block_kernel(p_ref, w_ref, b_ref, out_ref):
    """conv(5x5) + bias + ReLU + maxpool(2x2) as ONE im2col matmul + max.

    p_ref:   (4, TM, D)    bf16  -- 4 = positions inside each 2x2 pool window
    w_ref:   (D, 128)      bf16  -- Cout zero-padded to 128 lanes
    b_ref:   (1, 128)      f32
    out_ref: (TM, 128)     f32
    """
    npos, tm, d = p_ref.shape
    cpad = w_ref.shape[1]
    x = p_ref[...].reshape(npos * tm, d)                                   # (4*TM, D)
    y = jnp.dot(x, w_ref[...], preferred_element_type=jnp.float32)        # (4*TM, 128)
    y = y.reshape(npos, tm, cpad)
    acc = jnp.max(y, axis=0)                                               # maxpool(2x2)
    # bias + ReLU hoisted out of the max (exact: both monotone, bias shared)
    out_ref[...] = jnp.maximum(acc + b_ref[...], 0.0).astype(out_ref.dtype)


def mlp_kernel(x_ref, w1_ref, b1_ref, w2_ref, b2_ref, w3_ref, b3_ref, out_ref):
    """Linear(512->128)+ReLU -> Linear(128->128)+ReLU -> Linear(128->128) -> LogSoftmax.

    All dims are zero-padded to lane-dense widths; padded output classes carry a
    -1e30 bias so they contribute nothing to the softmax normalization.
    """
    h = jnp.dot(x_ref[...], w1_ref[...], preferred_element_type=jnp.float32) + b1_ref[...]
    h = jnp.maximum(h, 0.0)
    h = jnp.dot(h.astype(w2_ref.dtype), w2_ref[...],
                preferred_element_type=jnp.float32) + b2_ref[...]
    h = jnp.maximum(h, 0.0)
    logits = jnp.dot(h.astype(w3_ref.dtype), w3_ref[...],
                     preferred_element_type=jnp.float32) + b3_ref[...]
    m = jnp.max(logits, axis=-1, keepdims=True)
    z = logits - m
    lse = jnp.log(jnp.sum(jnp.exp(z), axis=-1, keepdims=True))
    out_ref[...] = (z - lse).astype(out_ref.dtype)


# ----------------------------------------------------------------------------
# JAX glue: patch extraction (im2col) grouped by 2x2 pool windows
# ----------------------------------------------------------------------------
def _pool_grouped_patches(x_nhwc, ksize, pool):
    """x_nhwc: (N, H, W, C) -> patches (pool*pool, N*P, C*k*k).

    Row index = n*P + (ph*Pw + pw);  D index order is (c, kh, kw), matching
    PyTorch's Conv2d weight flatten order.
    """
    N, H, W, C = x_nhwc.shape
    Ho, Wo = H - ksize + 1, W - ksize + 1
    # (N, Ho, Wo, C, kh, kw)
    patches = jnp.stack(
        [jnp.stack([x_nhwc[:, kh:kh + Ho, kw:kw + Wo, :] for kw in range(ksize)], axis=-1)
         for kh in range(ksize)],
        axis=-2,
    )
    D = C * ksize * ksize
    patches = patches.reshape(N, Ho, Wo, D)
    Ph, Pw = Ho // pool, Wo // pool
    patches = patches.reshape(N, Ph, pool, Pw, pool, D)
    patches = patches.transpose(2, 4, 0, 1, 3, 5)            # (pool, pool, N, Ph, Pw, D)
    patches = patches.reshape(pool * pool, N * Ph * Pw, D)   # (4, N*P, D)
    return patches, Ph, Pw, D


def conv_block(x_nhwc, w, b, ksize=5, pool=2):
    """w: (Cout, Cin, k, k) PyTorch layout; b: (Cout,). Returns (N, Ho/2, Wo/2, Cout)."""
    N = x_nhwc.shape[0]
    Cout = w.shape[0]
    patches, Ph, Pw, D = _pool_grouped_patches(x_nhwc, ksize, pool)
    NP = N * Ph * Pw

    tile_m = min(256, _round_up(NP, 8))
    Mpad = _padded_rows(NP, tile_m)
    Cpad = _round_up(Cout, 128)

    patches = jnp.pad(patches.astype(jnp.bfloat16), ((0, 0), (0, Mpad - NP), (0, 0)))
    wmat = jnp.zeros((D, Cpad), jnp.bfloat16).at[:, :Cout].set(
        w.reshape(Cout, D).T.astype(jnp.bfloat16))
    bmat = jnp.zeros((1, Cpad), jnp.float32).at[:, :Cout].set(b.astype(jnp.float32))

    out = pl.pallas_call(
        conv_block_kernel,
        out_shape=jax.ShapeDtypeStruct((Mpad, Cpad), jnp.float32),
        grid=(Mpad // tile_m,),
        in_specs=[
            pl.BlockSpec((pool * pool, tile_m, D), lambda i: (0, i, 0)),
            pl.BlockSpec((D, Cpad), lambda i: (0, 0)),
            pl.BlockSpec((1, Cpad), lambda i: (0, 0)),
        ],
        out_specs=pl.BlockSpec((tile_m, Cpad), lambda i: (i, 0)),
        compiler_params=pltpu.CompilerParams(dimension_semantics=("parallel",)),
    )(patches, wmat, bmat)

    return out[:NP, :Cout].reshape(N, Ph, Pw, Cout)


def mlp_forward(x, params):
    """x: (N, 400) -> log-probs (N, 10). Row-tiled, lane-padded MLP in one Pallas call."""
    N, K = x.shape
    H1, H2, O = 120, 84, 10
    Kpad = _round_up(K, 128)          # 400 -> 512
    H1p, H2p, Op = 128, 128, 128

    tile_rows = min(256, _round_up(N, 8))
    Npad = _padded_rows(N, tile_rows)

    xp = jnp.zeros((Npad, Kpad), jnp.bfloat16).at[:N, :K].set(x.astype(jnp.bfloat16))
    w1 = jnp.zeros((Kpad, H1p), jnp.bfloat16).at[:K, :H1].set(
        params["mlp_w1"].T.astype(jnp.bfloat16))
    b1 = jnp.zeros((1, H1p), jnp.float32).at[:, :H1].set(params["mlp_b1"].astype(jnp.float32))
    w2 = jnp.zeros((H1p, H2p), jnp.bfloat16).at[:H1, :H2].set(
        params["mlp_w2"].T.astype(jnp.bfloat16))
    b2 = jnp.zeros((1, H2p), jnp.float32).at[:, :H2].set(params["mlp_b2"].astype(jnp.float32))
    w3 = jnp.zeros((H2p, Op), jnp.bfloat16).at[:H2, :O].set(
        params["mlp_w3"].T.astype(jnp.bfloat16))
    # padded classes get a huge negative bias -> exp() underflows to 0 in the softmax
    b3 = jnp.full((1, Op), -1e30, jnp.float32).at[:, :O].set(params["mlp_b3"].astype(jnp.float32))

    out = pl.pallas_call(
        mlp_kernel,
        out_shape=jax.ShapeDtypeStruct((Npad, Op), jnp.float32),
        grid=(Npad // tile_rows,),
        in_specs=[
            pl.BlockSpec((tile_rows, Kpad), lambda i: (i, 0)),
            pl.BlockSpec((Kpad, H1p), lambda i: (0, 0)),
            pl.BlockSpec((1, H1p), lambda i: (0, 0)),
            pl.BlockSpec((H1p, H2p), lambda i: (0, 0)),
            pl.BlockSpec((1, H2p), lambda i: (0, 0)),
            pl.BlockSpec((H2p, Op), lambda i: (0, 0)),
            pl.BlockSpec((1, Op), lambda i: (0, 0)),
        ],
        out_specs=pl.BlockSpec((tile_rows, Op), lambda i: (i, 0)),
        compiler_params=pltpu.CompilerParams(dimension_semantics=("parallel",)),
    )(xp, w1, b1, w2, b2, w3, b3)

    return out[:N, :O]


# ----------------------------------------------------------------------------
# Full PseudoLeNet forward
# ----------------------------------------------------------------------------
def pseudo_lenet_forward(x_nchw, params):
    # ConstantPad2d(2, 0): (N,1,28,28) -> (N,1,32,32)
    x = jnp.pad(x_nchw, ((0, 0), (0, 0), (2, 2), (2, 2)))
    x = jnp.transpose(x, (0, 2, 3, 1))                          # NCHW -> NHWC
    x = conv_block(x, params["conv1_w"], params["conv1_b"])     # (N, 14, 14, 6)
    x = conv_block(x, params["conv2_w"], params["conv2_b"])     # (N, 5, 5, 16)
    # PyTorch flattens NCHW: order is (c, h, w)
    x = jnp.transpose(x, (0, 3, 1, 2)).reshape(x.shape[0], -1)  # (N, 400)
    return mlp_forward(x, params)                               # (N, 10) log-probs


# ----------------------------------------------------------------------------
# Deterministic parameter init (PyTorch-style uniform(-1/sqrt(fan_in), +1/sqrt(fan_in)))
# ----------------------------------------------------------------------------
def init_params(key):
    def u(k, shape, fan_in):
        bound = 1.0 / (float(fan_in) ** 0.5)
        return jax.random.uniform(k, shape, jnp.float32, -bound, bound)

    ks = jax.random.split(key, 10)
    return {
        "conv1_w": u(ks[0], (6, 1, 5, 5), 1 * 5 * 5),
        "conv1_b": u(ks[1], (6,), 1 * 5 * 5),
        "conv2_w": u(ks[2], (16, 6, 5, 5), 6 * 5 * 5),
        "conv2_b": u(ks[3], (16,), 6 * 5 * 5),
        "mlp_w1": u(ks[4], (120, 400), 400),
        "mlp_b1": u(ks[5], (120,), 400),
        "mlp_w2": u(ks[6], (84, 120), 120),
        "mlp_b2": u(ks[7], (84,), 120),
        "mlp_w3": u(ks[8], (10, 84), 84),
        "mlp_b3": u(ks[9], (10,), 84),
    }


if __name__ == "__main__":
    key = jax.random.PRNGKey(0)
    # small batch, shapes implied by the module: (N, 1, 28, 28)
    x = jax.random.normal(key, (2, 1, 28, 28), dtype=jnp.float32)
    params = init_params(jax.random.PRNGKey(42))

    fwd = jax.jit(pseudo_lenet_forward)
    y = jax.block_until_ready(fwd(x, params))

    assert y.shape == (2, 10), y.shape
    # log-softmax sanity: probabilities sum to 1 per row
    row_sums = jnp.exp(y).sum(axis=1)
    assert bool(jnp.all(jnp.abs(row_sums - 1.0) < 1e-4)), row_sums
    print("KERNEL_OK")
</pallas_src>

<mosaic_0001>
module attributes {stable_mosaic.version = 11 : i64} {
  func.func @conv_block_kernel(%arg0: i32, %arg1: memref<4x256x25xbf16, #tpu.memory_space<vmem>>, %arg2: memref<25x128xbf16, #tpu.memory_space<vmem>>, %arg3: memref<1x128xf32, #tpu.memory_space<vmem>>, %arg4: memref<256x128xf32, #tpu.memory_space<vmem>>) attributes {dimension_semantics = [#tpu.dimension_semantics<parallel>], iteration_bounds = array<i64: 2>, scalar_prefetch = 0 : i64, scratch_operands = 0 : i64, tpu.core_type = #tpu.core_type<tc>, window_params = [{transform_indices = @transform_0, window_bounds = array<i64: 4, 256, 25>}, {pipeline_mode = #tpu.pipeline_mode<synchronous>, transform_indices = @transform_1, window_bounds = array<i64: 25, 128>}, {pipeline_mode = #tpu.pipeline_mode<synchronous>, transform_indices = @transform_2, window_bounds = array<i64: 1, 128>}, {transform_indices = @transform_3, window_bounds = array<i64: 256, 128>}]} {
    %c0 = arith.constant 0 : index
    %c0_0 = arith.constant 0 : index
    %c0_1 = arith.constant 0 : index
    %0 = vector.load %arg1[%c0, %c0_0, %c0_1] : memref<4x256x25xbf16, #tpu.memory_space<vmem>>, vector<4x256x25xbf16>
    %1 = vector.shape_cast %0 : vector<4x256x25xbf16> to vector<1024x25xbf16>
    %c0_2 = arith.constant 0 : index
    %c0_3 = arith.constant 0 : index
    %2 = vector.load %arg2[%c0_2, %c0_3] : memref<25x128xbf16, #tpu.memory_space<vmem>>, vector<25x128xbf16>
    %cst = arith.constant dense<0.000000e+00> : vector<1024x128xf32>
    %3 = tpu.matmul %1, %2, %cst {dimension_numbers = #tpu.dot_dimension_numbers<[1], [0], [0], [1], [0, 0, 1, 1], [], []>} : vector<1024x25xbf16>, vector<25x128xbf16>, vector<1024x128xf32> -> vector<1024x128xf32>
    %4 = vector.shape_cast %3 : vector<1024x128xf32> to vector<4x256x128xf32>
    %cst_4 = arith.constant dense<0xFF800000> : vector<256x128xf32>
    %5 = vector.multi_reduction <maximumf>, %4, %cst_4 [0] : vector<4x256x128xf32> to vector<256x128xf32>
    %c0_5 = arith.constant 0 : index
    %c0_6 = arith.constant 0 : index
    %6 = vector.load %arg3[%c0_5, %c0_6] : memref<1x128xf32, #tpu.memory_space<vmem>>, vector<1x128xf32>
    %7 = vector.broadcast %6 : vector<1x128xf32> to vector<256x128xf32>
    %8 = arith.addf %5, %7 : vector<256x128xf32>
    %cst_7 = arith.constant 0.000000e+00 : f32
    %9 = vector.broadcast %cst_7 : f32 to vector<256x128xf32>
    %10 = arith.maximumf %8, %9 : vector<256x128xf32>
    %c0_8 = arith.constant 0 : index
    %c0_9 = arith.constant 0 : index
    %11 = vector.load %arg4[%c0_8, %c0_9] : memref<256x128xf32, #tpu.memory_space<vmem>>, vector<256x128xf32>
    tpu.vector_store %arg4[%c0_8, %c0_9], %10 {strides = array<i32>} : memref<256x128xf32, #tpu.memory_space<vmem>>, vector<256x128xf32>,
    return
  }
  func.func @transform_0(%arg0: i32) -> (i32, i32, i32) {
    %c0_i32 = arith.constant 0 : i32
    %c0_i32_0 = arith.constant 0 : i32
    %c0_i32_1 = arith.constant 0 : i32
    return %c0_i32, %arg0, %c0_i32_0 : i32, i32, i32
  }
  func.func @transform_1(%arg0: i32) -> (i32, i32) {
    %c0_i32 = arith.constant 0 : i32
    %c0_i32_0 = arith.constant 0 : i32
    %c0_i32_1 = arith.constant 0 : i32
    return %c0_i32, %c0_i32_0 : i32, i32
  }
  func.func @transform_2(%arg0: i32) -> (i32, i32) {
    %c0_i32 = arith.constant 0 : i32
    %c0_i32_0 = arith.constant 0 : i32
    %c0_i32_1 = arith.constant 0 : i32
    return %c0_i32, %c0_i32_0 : i32, i32
  }
  func.func @transform_3(%arg0: i32) -> (i32, i32) {
    %c0_i32 = arith.constant 0 : i32
    %c0_i32_0 = arith.constant 0 : i32
    return %arg0, %c0_i32 : i32, i32
  }
}

module attributes {stable_mosaic.version = 11 : i64} {
  func.func @conv_block_kernel(%arg0: i32, %arg1: memref<4x56x150xbf16, #tpu.memory_space<vmem>>, %arg2: memref<150x128xbf16, #tpu.memory_space<vmem>>, %arg3: memref<1x128xf32, #tpu.memory_space<vmem>>, %arg4: memref<56x128xf32, #tpu.memory_space<vmem>>) attributes {dimension_semantics = [#tpu.dimension_semantics<parallel>], iteration_bounds = array<i64: 1>, scalar_prefetch = 0 : i64, scratch_operands = 0 : i64, tpu.core_type = #tpu.core_type<tc>, window_params = [{transform_indices = @transform_0, window_bounds = array<i64: 4, 56, 150>}, {pipeline_mode = #tpu.pipeline_mode<synchronous>, transform_indices = @transform_1, window_bounds = array<i64: 150, 128>}, {pipeline_mode = #tpu.pipeline_mode<synchronous>, transform_indices = @transform_2, window_bounds = array<i64: 1, 128>}, {transform_indices = @transform_3, window_bounds = array<i64: 56, 128>}]} {
    %c0 = arith.constant 0 : index
    %c0_0 = arith.constant 0 : index
    %c0_1 = arith.constant 0 : index
    %0 = vector.load %arg1[%c0, %c0_0, %c0_1] : memref<4x56x150xbf16, #tpu.memory_space<vmem>>, vector<4x56x150xbf16>
    %1 = vector.shape_cast %0 : vector<4x56x150xbf16> to vector<224x150xbf16>
    %c0_2 = arith.constant 0 : index
    %c0_3 = arith.constant 0 : index
    %2 = vector.load %arg2[%c0_2, %c0_3] : memref<150x128xbf16, #tpu.memory_space<vmem>>, vector<150x128xbf16>
    %cst = arith.constant dense<0.000000e+00> : vector<224x128xf32>
    %3 = tpu.matmul %1, %2, %cst {dimension_numbers = #tpu.dot_dimension_numbers<[1], [0], [0], [1], [0, 0, 1, 1], [], []>} : vector<224x150xbf16>, vector<150x128xbf16>, vector<224x128xf32> -> vector<224x128xf32>
    %4 = vector.shape_cast %3 : vector<224x128xf32> to vector<4x56x128xf32>
    %cst_4 = arith.constant dense<0xFF800000> : vector<56x128xf32>
    %5 = vector.multi_reduction <maximumf>, %4, %cst_4 [0] : vector<4x56x128xf32> to vector<56x128xf32>
    %c0_5 = arith.constant 0 : index
    %c0_6 = arith.constant 0 : index
    %6 = vector.load %arg3[%c0_5, %c0_6] : memref<1x128xf32, #tpu.memory_space<vmem>>, vector<1x128xf32>
    %7 = vector.broadcast %6 : vector<1x128xf32> to vector<56x128xf32>
    %8 = arith.addf %5, %7 : vector<56x128xf32>
    %cst_7 = arith.constant 0.000000e+00 : f32
    %9 = vector.broadcast %cst_7 : f32 to vector<56x128xf32>
    %10 = arith.maximumf %8, %9 : vector<56x128xf32>
    %c0_8 = arith.constant 0 : index
    %c0_9 = arith.constant 0 : index
    %11 = vector.load %arg4[%c0_8, %c0_9] : memref<56x128xf32, #tpu.memory_space<vmem>>, vector<56x128xf32>
    tpu.vector_store %arg4[%c0_8, %c0_9], %10 {strides = array<i32>} : memref<56x128xf32, #tpu.memory_space<vmem>>, vector<56x128xf32>,
    return
  }
  func.func @transform_0(%arg0: i32) -> (i32, i32, i32) {
    %c0_i32 = arith.constant 0 : i32
    %c0_i32_0 = arith.constant 0 : i32
    %c0_i32_1 = arith.constant 0 : i32
    return %c0_i32, %arg0, %c0_i32_0 : i32, i32, i32
  }
  func.func @transform_1(%arg0: i32) -> (i32, i32) {
    %c0_i32 = arith.constant 0 : i32
    %c0_i32_0 = arith.constant 0 : i32
    %c0_i32_1 = arith.constant 0 : i32
    return %c0_i32, %c0_i32_0 : i32, i32
  }
  func.func @transform_2(%arg0: i32) -> (i32, i32) {
    %c0_i32 = arith.constant 0 : i32
    %c0_i32_0 = arith.constant 0 : i32
    %c0_i32_1 = arith.constant 0 : i32
    return %c0_i32, %c0_i32_0 : i32, i32
  }
  func.func @transform_3(%arg0: i32) -> (i32, i32) {
    %c0_i32 = arith.constant 0 : i32
    %c0_i32_0 = arith.constant 0 : i32
    return %arg0, %c0_i32 : i32, i32
  }
}

module attributes {stable_mosaic.version = 11 : i64} {
  func.func @mlp_kernel(%arg0: i32, %arg1: memref<8x512xbf16, #tpu.memory_space<vmem>>, %arg2: memref<512x128xbf16, #tpu.memory_space<vmem>>, %arg3: memref<1x128xf32, #tpu.memory_space<vmem>>, %arg4: memref<128x128xbf16, #tpu.memory_space<vmem>>, %arg5: memref<1x128xf32, #tpu.memory_space<vmem>>, %arg6: memref<128x128xbf16, #tpu.memory_space<vmem>>, %arg7: memref<1x128xf32, #tpu.memory_space<vmem>>, %arg8: memref<8x128xf32, #tpu.memory_space<vmem>>) attributes {dimension_semantics = [#tpu.dimension_semantics<parallel>], iteration_bounds = array<i64: 1>, scalar_prefetch = 0 : i64, scratch_operands = 0 : i64, tpu.core_type = #tpu.core_type<tc>, window_params = [{transform_indices = @transform_0, window_bounds = array<i64: 8, 512>}, {pipeline_mode = #tpu.pipeline_mode<synchronous>, transform_indices = @transform_1, window_bounds = array<i64: 512, 128>}, {pipeline_mode = #tpu.pipeline_mode<synchronous>, transform_indices = @transform_2, window_bounds = array<i64: 1, 128>}, {pipeline_mode = #tpu.pipeline_mode<synchronous>, transform_indices = @transform_3, window_bounds = array<i64: 128, 128>}, {pipeline_mode = #tpu.pipeline_mode<synchronous>, transform_indices = @transform_4, window_bounds = array<i64: 1, 128>}, {pipeline_mode = #tpu.pipeline_mode<synchronous>, transform_indices = @transform_5, window_bounds = array<i64: 128, 128>}, {pipeline_mode = #tpu.pipeline_mode<synchronous>, transform_indices = @transform_6, window_bounds = array<i64: 1, 128>}, {transform_indices = @transform_7, window_bounds = array<i64: 8, 128>}]} {
    %c0 = arith.constant 0 : index
    %c0_0 = arith.constant 0 : index
    %0 = vector.load %arg1[%c0, %c0_0] : memref<8x512xbf16, #tpu.memory_space<vmem>>, vector<8x512xbf16>
    %c0_1 = arith.constant 0 : index
    %c0_2 = arith.constant 0 : index
    %1 = vector.load %arg2[%c0_1, %c0_2] : memref<512x128xbf16, #tpu.memory_space<vmem>>, vector<512x128xbf16>
    %cst = arith.constant dense<0.000000e+00> : vector<8x128xf32>
    %2 = tpu.matmul %0, %1, %cst {dimension_numbers = #tpu.dot_dimension_numbers<[1], [0], [0], [1], [0, 0, 1, 1], [], []>} : vector<8x512xbf16>, vector<512x128xbf16>, vector<8x128xf32> -> vector<8x128xf32>
    %c0_3 = arith.constant 0 : index
    %c0_4 = arith.constant 0 : index
    %3 = vector.load %arg3[%c0_3, %c0_4] : memref<1x128xf32, #tpu.memory_space<vmem>>, vector<1x128xf32>
    %4 = vector.broadcast %3 : vector<1x128xf32> to vector<8x128xf32>
    %5 = arith.addf %2, %4 : vector<8x128xf32>
    %cst_5 = arith.constant 0.000000e+00 : f32
    %6 = vector.broadcast %cst_5 : f32 to vector<8x128xf32>
    %7 = arith.maximumf %5, %6 : vector<8x128xf32>
    %8 = arith.truncf %7 : vector<8x128xf32> to vector<8x128xbf16>
    %c0_6 = arith.constant 0 : index
    %c0_7 = arith.constant 0 : index
    %9 = vector.load %arg4[%c0_6, %c0_7] : memref<128x128xbf16, #tpu.memory_space<vmem>>, vector<128x128xbf16>
    %cst_8 = arith.constant dense<0.000000e+00> : vector<8x128xf32>
    %10 = tpu.matmul %8, %9, %cst_8 {dimension_numbers = #tpu.dot_dimension_numbers<[1], [0], [0], [1], [0, 0, 1, 1], [], []>} : vector<8x128xbf16>, vector<128x128xbf16>, vector<8x128xf32> -> vector<8x128xf32>
    %c0_9 = arith.constant 0 : index
    %c0_10 = arith.constant 0 : index
    %11 = vector.load %arg5[%c0_9, %c0_10] : memref<1x128xf32, #tpu.memory_space<vmem>>, vector<1x128xf32>
    %12 = vector.broadcast %11 : vector<1x128xf32> to vector<8x128xf32>
    %13 = arith.addf %10, %12 : vector<8x128xf32>
    %cst_11 = arith.constant 0.000000e+00 : f32
    %14 = vector.broadcast %cst_11 : f32 to vector<8x128xf32>
    %15 = arith.maximumf %13, %14 : vector<8x128xf32>
    %16 = arith.truncf %15 : vector<8x128xf32> to vector<8x128xbf16>
    %c0_12 = arith.constant 0 : index
    %c0_13 = arith.constant 0 : index
    %17 = vector.load %arg6[%c0_12, %c0_13] : memref<128x128xbf16, #tpu.memory_space<vmem>>, vector<128x128xbf16>
    %cst_14 = arith.constant dense<0.000000e+00> : vector<8x128xf32>
    %18 = tpu.matmul %16, %17, %cst_14 {dimension_numbers = #tpu.dot_dimension_numbers<[1], [0], [0], [1], [0, 0, 1, 1], [], []>} : vector<8x128xbf16>, vector<128x128xbf16>, vector<8x128xf32> -> vector<8x128xf32>
    %c0_15 = arith.constant 0 : index
    %c0_16 = arith.constant 0 : index
    %19 = vector.load %arg7[%c0_15, %c0_16] : memref<1x128xf32, #tpu.memory_space<vmem>>, vector<1x128xf32>
    %20 = vector.broadcast %19 : vector<1x128xf32> to vector<8x128xf32>
    %21 = arith.addf %18, %20 : vector<8x128xf32>
    %cst_17 = arith.constant dense<0xFF800000> : vector<8xf32>
    %22 = vector.multi_reduction <maximumf>, %21, %cst_17 [1] : vector<8x128xf32> to vector<8xf32>
    %23 = vector.shape_cast %22 : vector<8xf32> to vector<8x1xf32>
    %24 = vector.broadcast %23 : vector<8x1xf32> to vector<8x128xf32>
    %25 = arith.subf %21, %24 : vector<8x128xf32>
    %26 = math.exp %25 : vector<8x128xf32>
    %cst_18 = arith.constant dense<0.000000e+00> : vector<8xf32>
    %27 = vector.multi_reduction <add>, %26, %cst_18 [1] : vector<8x128xf32> to vector<8xf32>
    %28 = vector.shape_cast %27 : vector<8xf32> to vector<8x1xf32>
    %29 = math.log %28 : vector<8x1xf32>
    %30 = vector.broadcast %29 : vector<8x1xf32> to vector<8x128xf32>
    %31 = arith.subf %25, %30 : vector<8x128xf32>
    %c0_19 = arith.constant 0 : index
    %c0_20 = arith.constant 0 : index
    %32 = vector.load %arg8[%c0_19, %c0_20] : memref<8x128xf32, #tpu.memory_space<vmem>>, vector<8x128xf32>
    tpu.vector_store %arg8[%c0_19, %c0_20], %31 {strides = array<i32>} : memref<8x128xf32, #tpu.memory_space<vmem>>, vector<8x128xf32>,
    return
  }
  func.func @transform_0(%arg0: i32) -> (i32, i32) {
    %c0_i32 = arith.constant 0 : i32
    %c0_i32_0 = arith.constant 0 : i32
    return %arg0, %c0_i32 : i32, i32
  }
  func.func @transform_1(%arg0: i32) -> (i32, i32) {
    %c0_i32 = arith.constant 0 : i32
    %c0_i32_0 = arith.constant 0 : i32
    %c0_i32_1 = arith.constant 0 : i32
    return %c0_i32, %c0_i32_0 : i32, i32
  }
  func.func @transform_2(%arg0: i32) -> (i32, i32) {
    %c0_i32 = arith.constant 0 : i32
    %c0_i32_0 = arith.constant 0 : i32
    %c0_i32_1 = arith.constant 0 : i32
    return %c0_i32, %c0_i32_0 : i32, i32
  }
  func.func @transform_3(%arg0: i32) -> (i32, i32) {
    %c0_i32 = arith.constant 0 : i32
    %c0_i32_0 = arith.constant 0 : i32
    %c0_i32_1 = arith.constant 0 : i32
    return %c0_i32, %c0_i32_0 : i32, i32
  }
  func.func @transform_4(%arg0: i32) -> (i32, i32) {
    %c0_i32 = arith.constant 0 : i32
    %c0_i32_0 = arith.constant 0 : i32
    %c0_i32_1 = arith.constant 0 : i32
    return %c0_i32, %c0_i32_0 : i32, i32
  }
  func.func @transform_5(%arg0: i32) -> (i32, i32) {
    %c0_i32 = arith.constant 0 : i32
    %c0_i32_0 = arith.constant 0 : i32
    %c0_i32_1 = arith.constant 0 : i32
    return %c0_i32, %c0_i32_0 : i32, i32
  }
  func.func @transform_6(%arg0: i32) -> (i32, i32) {
    %c0_i32 = arith.constant 0 : i32
    %c0_i32_0 = arith.constant 0 : i32
    %c0_i32_1 = arith.constant 0 : i32
    return %c0_i32, %c0_i32_0 : i32, i32
  }
  func.func @transform_7(%arg0: i32) -> (i32, i32) {
    %c0_i32 = arith.constant 0 : i32
    %c0_i32_0 = arith.constant 0 : i32
    return %arg0, %c0_i32 : i32, i32
  }
}

</mosaic_0001>

<bundles_post_ra>
// kernel: pseudo_lenet_forward.3
= control target key start
LH: loop header
LB: loop body
LE: loop exit
PB: predicated region body
PF: predicated region fallthrough
CT: control target
= control target key end

     0   :  { %s2678_s12 = smov 0   ;;  %s2680_s13 = smov 0   ;;  %s3261_s0 = inlined_call_operand.vmem [shape: bf16[4,512,25], index: 0, kind: input, shape index: {}]   ;;  %s3262_s1 = inlined_call_operand.vmem [shape: bf16[25,128], index: 1, kind: input, shape index: {}]   ;;  %s3263_s2 = inlined_call_operand.vmem [shape: f32[1,128], index: 2, kind: input, shape index: {}]   ;;  %s3264_s3 = inlined_call_operand.vmem [shape: f32[512,128], index: 3, kind: output, shape index: {}]  }
   0x1   :  { %s2682_s14 = smov 0  }
   0x2 LB: > { %s2195_s15 = sadd.s32 4294967295, %s2655_s14   ;;  %s2695_s16 = sadd.s32 1, %s2655_s14   ;;  %s2655_s14 = sphi %s2682_s14, %s3297_s14   ;;  %s2651_s13 = sphi %s2680_s13, %s3296_s13   ;;  %s2647_s12 = sphi %s2678_s12, %s3295_s12  }
   0x3   : > { %s17_s17 = ssub.s32 %s2655_s14, %s2695_s16  ;;  %s20_s18 = sadd.s32 1, %s2651_s13 }
   0x4   : > { %p18_p0 = scmp.eq.s32.totalorder %s17_s17, 0  ;;  %p27_p1 = scmp.ne.s32.totalorder %s2651_s13, %s2647_s12 }
   0x5   : > { %p28_p2 = scmp.eq.s32.totalorder %s2655_s14, 0  ;;  %p2198_p4 = scmp.ge.s32.totalorder %s2655_s14, 2 }
   0x6   : > { %s2704_s19 = scalar_select %p18_p0, %s2651_s13, %s20_s18  }
   0x7   : > { %p29_p3 = por %p28_p2, %p27_p1  ;;  %127 = sbr.rel (%p2198_p4) target bundleno = 48 (0x30), region = 24 }
   0xc   : > { %130 = sbr.rel (!%p29_p3) target bundleno = 48 (0x30), region = 28  ;;  %s132_s20 = sand.u32 (%p29_p3), 1, %s2651_s13  }
   0xd   : > { %s2339_s21 = sshll.u32 (%p29_p3), %s2655_s14, 7  ;;  %s2199_s22 = sshll.u32 (%p29_p3), %s132_s20, 9 }
   0xe   : > { %s2712_s25 = scalar_lea.vmem (%p29_p3), %s3261_s0, %s2339_s21  ;;  %s2717_s26 = scalar_lea.vmem (%p29_p3), [#allocation2], %s2199_s22 }
   0xf   : > { %v154_v0 = vld [vmem:[%s2712_s25] sm:$0xff] (%p29_p3)   ;;  %v158_v1 = vld [vmem:[%s2712_s25 + $0x8] sm:$0xff] (%p29_p3)   ;;  %v162_v2 = vld [vmem:[%s2712_s25 + $0x10] sm:$0xff] (%p29_p3)  }
  0x10   : > { %155 = vst [vmem:[%s2717_s26] sm:$0xff] (%p29_p3), %v154_v0   ;;  %159 = vst [vmem:[%s2717_s26 + $0x8] sm:$0xff] (%p29_p3), %v158_v1   ;;  %v166_v3 = vld [vmem:[%s2712_s25 + $0x18] sm:$0xff] (%p29_p3)   ;;  %v170_v4 = vld [vmem:[%s2712_s25 + $0x20] sm:$0xff] (%p29_p3)  }
  0x11   : > { %163 = vst [vmem:[%s2717_s26 + $0x10] sm:$0xff] %v162_v2   ;;  %v174_v5 = vld [vmem:[%s2712_s25 + $0x28] sm:$0xff]   ;;  %167 = vst [vmem:[%s2717_s26 + $0x18] sm:$0xff] %v166_v3   ;;  %v178_v6 = vld [vmem:[%s2712_s25 + $0x30] sm:$0xff]  }
  0x12   : > { %171 = vst [vmem:[%s2717_s26 + $0x20] sm:$0xff] %v170_v4   ;;  %175 = vst [vmem:[%s2717_s26 + $0x28] sm:$0xff] %v174_v5   ;;  %v182_v7 = vld [vmem:[%s2712_s25 + $0x38] sm:$0xff]   ;;  %v186_v8 = vld [vmem:[%s2712_s25 + $0x40] sm:$0xff]  }
  0x13   : > { %179 = vst [vmem:[%s2717_s26 + $0x30] sm:$0xff] %v178_v6   ;;  %183 = vst [vmem:[%s2717_s26 + $0x38] sm:$0xff] %v182_v7   ;;  %v190_v9 = vld [vmem:[%s2712_s25 + $0x48] sm:$0xff]   ;;  %v194_v10 = vld [vmem:[%s2712_s25 + $0x50] sm:$0xff]  }
  0x14   : > { %187 = vst [vmem:[%s2717_s26 + $0x40] sm:$0xff] %v186_v8   ;;  %v198_v11 = vld [vmem:[%s2712_s25 + $0x58] sm:$0xff]   ;;  %191 = vst [vmem:[%s2717_s26 + $0x48] sm:$0xff] %v190_v9   ;;  %v202_v12 = vld [vmem:[%s2712_s25 + $0x60] sm:$0xff]  }
  0x15   : > { %195 = vst [vmem:[%s2717_s26 + $0x50] sm:$0xff] %v194_v10   ;;  %199 = vst [vmem:[%s2717_s26 + $0x58] sm:$0xff] %v198_v11   ;;  %v206_v13 = vld [vmem:[%s2712_s25 + $0x68] sm:$0xff]   ;;  %v210_v14 = vld [vmem:[%s2712_s25 + $0x70] sm:$0xff]  }
  0x16   : > { %203 = vst [vmem:[%s2717_s26 + $0x60] sm:$0xff] %v202_v12   ;;  %207 = vst [vmem:[%s2717_s26 + $0x68] sm:$0xff] %v206_v13   ;;  %v214_v15 = vld [vmem:[%s2712_s25 + $0x78] sm:$0xff]   ;;  %v218_v16 = vld [vmem:[%s2712_s25 + $0x100] sm:$0xff]  }
  0x17   : > { %211 = vst [vmem:[%s2717_s26 + $0x70] sm:$0xff] %v210_v14   ;;  %v222_v17 = vld [vmem:[%s2712_s25 + $0x108] sm:$0xff]   ;;  %215 = vst [vmem:[%s2717_s26 + $0x78] sm:$0xff] %v214_v15   ;;  %v226_v18 = vld [vmem:[%s2712_s25 + $0x110] sm:$0xff]  }
  0x18   : > { %219 = vst [vmem:[%s2717_s26 + $0x80] sm:$0xff] %v218_v16   ;;  %223 = vst [vmem:[%s2717_s26 + $0x88] sm:$0xff] %v222_v17   ;;  %v230_v19 = vld [vmem:[%s2712_s25 + $0x118] sm:$0xff]   ;;  %v234_v20 = vld [vmem:[%s2712_s25 + $0x120] sm:$0xff]  }
  0x19   : > { %227 = vst [vmem:[%s2717_s26 + $0x90] sm:$0xff] %v226_v18   ;;  %231 = vst [vmem:[%s2717_s26 + $0x98] sm:$0xff] %v230_v19   ;;  %v238_v21 = vld [vmem:[%s2712_s25 + $0x128] sm:$0xff]   ;;  %v242_v22 = vld [vmem:[%s2712_s25 + $0x130] sm:$0xff]  }
  0x1a   : > { %235 = vst [vmem:[%s2717_s26 + $0xa0] sm:$0xff] %v234_v20   ;;  %v246_v23 = vld [vmem:[%s2712_s25 + $0x138] sm:$0xff]   ;;  %239 = vst [vmem:[%s2717_s26 + $0xa8] sm:$0xff] %v238_v21   ;;  %v250_v24 = vld [vmem:[%s2712_s25 + $0x140] sm:$0xff]  }
  0x1b   : > { %243 = vst [vmem:[%s2717_s26 + $0xb0] sm:$0xff] %v242_v22   ;;  %247 = vst [vmem:[%s2717_s26 + $0xb8] sm:$0xff] %v246_v23   ;;  %v254_v25 = vld [vmem:[%s2712_s25 + $0x148] sm:$0xff]   ;;  %v258_v26 = vld [vmem:[%s2712_s25 + $0x150] sm:$0xff]  }
  0x1c   : > { %251 = vst [vmem:[%s2717_s26 + $0xc0] sm:$0xff] %v250_v24   ;;  %255 = vst [vmem:[%s2717_s26 + $0xc8] sm:$0xff] %v254_v25   ;;  %v262_v27 = vld [vmem:[%s2712_s25 + $0x158] sm:$0xff]   ;;  %v266_v28 = vld [vmem:[%s2712_s25 + $0x160] sm:$0xff]  }
  0x1d   : > { %259 = vst [vmem:[%s2717_s26 + $0xd0] sm:$0xff] %v258_v26   ;;  %v270_v29 = vld [vmem:[%s2712_s25 + $0x168] sm:$0xff]   ;;  %263 = vst [vmem:[%s2717_s26 + $0xd8] sm:$0xff] %v262_v27   ;;  %v274_v30 = vld [vmem:[%s2712_s25 + $0x170] sm:$0xff]  }
  0x1e   : > { %267 = vst [vmem:[%s2717_s26 + $0xe0] sm:$0xff] %v266_v28   ;;  %271 = vst [vmem:[%s2717_s26 + $0xe8] sm:$0xff] %v270_v29   ;;  %v278_v31 = vld [vmem:[%s2712_s25 + $0x178] sm:$0xff]   ;;  %v282_v32 = vld [vmem:[%s2712_s25 + $0x200] sm:$0xff]  }
  0x1f   : > { %275 = vst [vmem:[%s2717_s26 + $0xf0] sm:$0xff] %v274_v30   ;;  %279 = vst [vmem:[%s2717_s26 + $0xf8] sm:$0xff] %v278_v31   ;;  %v286_v33 = vld [vmem:[%s2712_s25 + $0x208] sm:$0xff]   ;;  %v290_v34 = vld [vmem:[%s2712_s25 + $0x210] sm:$0xff]  }
  0x20   : > { %283 = vst [vmem:[%s2717_s26 + $0x100] sm:$0xff] %v282_v32   ;;  %v294_v35 = vld [vmem:[%s2712_s25 + $0x218] sm:$0xff]   ;;  %287 = vst [vmem:[%s2717_s26 + $0x108] sm:$0xff] %v286_v33   ;;  %v298_v36 = vld [vmem:[%s2712_s25 + $0x220] sm:$0xff]  }
  0x21   : > { %291 = vst [vmem:[%s2717_s26 + $0x110] sm:$0xff] %v290_v34   ;;  %295 = vst [vmem:[%s2717_s26 + $0x118] sm:$0xff] %v294_v35   ;;  %v302_v37 = vld [vmem:[%s2712_s25 + $0x228] sm:$0xff]   ;;  %v306_v38 = vld [vmem:[%s2712_s25 + $0x230] sm:$0xff]  }
  0x22   : > { %299 = vst [vmem:[%s2717_s26 + $0x120] sm:$0xff] %v298_v36   ;;  %303 = vst [vmem:[%s2717_s26 + $0x128] sm:$0xff] %v302_v37   ;;  %v310_v39 = vld [vmem:[%s2712_s25 + $0x238] sm:$0xff]   ;;  %v314_v40 = vld [vmem:[%s2712_s25 + $0x240] sm:$0xff]  }
  0x23   : > { %307 = vst [vmem:[%s2717_s26 + $0x130] sm:$0xff] %v306_v38   ;;  %v318_v41 = vld [vmem:[%s2712_s25 + $0x248] sm:$0xff]   ;;  %311 = vst [vmem:[%s2717_s26 + $0x138] sm:$0xff] %v310_v39   ;;  %v322_v42 = vld [vmem:[%s2712_s25 + $0x250] sm:$0xff]  }
  0x24   : > { %315 = vst [vmem:[%s2717_s26 + $0x140] sm:$0xff] %v314_v40   ;;  %319 = vst [vmem:[%s2717_s26 + $0x148] sm:$0xff] %v318_v41   ;;  %v326_v43 = vld [vmem:[%s2712_s25 + $0x258] sm:$0xff]   ;;  %v330_v44 = vld [vmem:[%s2712_s25 + $0x260] sm:$0xff]  }
  0x25   : > { %323 = vst [vmem:[%s2717_s26 + $0x150] sm:$0xff] %v322_v42   ;;  %327 = vst [vmem:[%s2717_s26 + $0x158] sm:$0xff] %v326_v43   ;;  %v334_v45 = vld [vmem:[%s2712_s25 + $0x268] sm:$0xff]   ;;  %v338_v46 = vld [vmem:[%s2712_s25 + $0x270] sm:$0xff]  }
  0x26   : > { %331 = vst [vmem:[%s2717_s26 + $0x160] sm:$0xff] %v330_v44   ;;  %v342_v47 = vld [vmem:[%s2712_s25 + $0x278] sm:$0xff]   ;;  %335 = vst [vmem:[%s2717_s26 + $0x168] sm:$0xff] %v334_v45   ;;  %v346_v48 = vld [vmem:[%s2712_s25 + $0x300] sm:$0xff]  }
  0x27   : > { %339 = vst [vmem:[%s2717_s26 + $0x170] sm:$0xff] %v338_v46   ;;  %343 = vst [vmem:[%s2717_s26 + $0x178] sm:$0xff] %v342_v47   ;;  %v350_v49 = vld [vmem:[%s2712_s25 + $0x308] sm:$0xff]   ;;  %v354_v50 = vld [vmem:[%s2712_s25 + $0x310] sm:$0xff]  }
  0x28   : > { %347 = vst [vmem:[%s2717_s26 + $0x180] sm:$0xff] %v346_v48   ;;  %351 = vst [vmem:[%s2717_s26 + $0x188] sm:$0xff] %v350_v49   ;;  %v358_v51 = vld [vmem:[%s2712_s25 + $0x318] sm:$0xff]   ;;  %v362_v52 = vld [vmem:[%s2712_s25 + $0x320] sm:$0xff]  }
  0x29   : > { %355 = vst [vmem:[%s2717_s26 + $0x190] sm:$0xff] %v354_v50   ;;  %v366_v53 = vld [vmem:[%s2712_s25 + $0x328] sm:$0xff]   ;;  %359 = vst [vmem:[%s2717_s26 + $0x198] sm:$0xff] %v358_v51   ;;  %v370_v54 = vld [vmem:[%s2712_s25 + $0x330] sm:$0xff]  }
  0x2a   : > { %363 = vst [vmem:[%s2717_s26 + $0x1a0] sm:$0xff] %v362_v52   ;;  %367 = vst [vmem:[%s2717_s26 + $0x1a8] sm:$0xff] %v366_v53   ;;  %v374_v55 = vld [vmem:[%s2712_s25 + $0x338] sm:$0xff]   ;;  %v378_v56 = vld [vmem:[%s2712_s25 + $0x340] sm:$0xff]  }
  0x2b   : > { %371 = vst [vmem:[%s2717_s26 + $0x1b0] sm:$0xff] %v370_v54   ;;  %375 = vst [vmem:[%s2717_s26 + $0x1b8] sm:$0xff] %v374_v55   ;;  %v382_v57 = vld [vmem:[%s2712_s25 + $0x348] sm:$0xff]   ;;  %v386_v58 = vld [vmem:[%s2712_s25 + $0x350] sm:$0xff]  }
  0x2c   : > { %379 = vst [vmem:[%s2717_s26 + $0x1c0] sm:$0xff] %v378_v56   ;;  %v390_v59 = vld [vmem:[%s2712_s25 + $0x358] sm:$0xff]   ;;  %383 = vst [vmem:[%s2717_s26 + $0x1c8] sm:$0xff] %v382_v57   ;;  %v394_v60 = vld [vmem:[%s2712_s25 + $0x360] sm:$0xff]  }
  0x2d   : > { %387 = vst [vmem:[%s2717_s26 + $0x1d0] sm:$0xff] %v386_v58   ;;  %391 = vst [vmem:[%s2717_s26 + $0x1d8] sm:$0xff] %v390_v59   ;;  %v398_v61 = vld [vmem:[%s2712_s25 + $0x368] sm:$0xff]   ;;  %v402_v62 = vld [vmem:[%s2712_s25 + $0x370] sm:$0xff]  }
  0x2e   : > { %395 = vst [vmem:[%s2717_s26 + $0x1e0] sm:$0xff] %v394_v60   ;;  %399 = vst [vmem:[%s2717_s26 + $0x1e8] sm:$0xff] %v398_v61   ;;  %v406_v63 = vld [vmem:[%s2712_s25 + $0x378] sm:$0xff]  }
  0x2f   : > { %403 = vst [vmem:[%s2717_s26 + $0x1f0] sm:$0xff] %v402_v62   ;;  %407 = vst [vmem:[%s2717_s26 + $0x1f8] sm:$0xff] %v406_v63  }
  0x30 PF: > { %p2202_p5 = scmp.ge.s32.totalorder %s2655_s14, 1  ;;  %p688_p6 = scmp.lt.s32.totalorder %s2655_s14, 3 }
  0x32   : > { %p689_p7 = pnand %p2202_p5, %p688_p6 }
  0x34   : > { %692 = sbr.rel (%p689_p7) target bundleno = 400 (0x190), region = 69 }
  0x39   : > { %v2567_v0 = vld [vmem:[%s3262_s1 + $0x8] sm:$0x1f]   ;;  %vm1382_vm0 = vcmask 1043456   ;;  %vm1383_vm1 = vcmask 1044480   ;;  %v2657_v1 = vmov 65535   ;;  %s695_s29 = sand.u32 1, %s2647_s12  }
  0x3a   : > { %v1384_v2 = vsel %vm1382_vm0, 4294967295, %v2657_v1  ;;  %s2203_s30 = sshll.u32 %s695_s29, 9  ;;  %v2568_v5 = vld [vmem:[%s3262_s1] sm:$0xff]   ;;  %vm1189_vm2 = vcmask 203776   ;;  %s2204_s7 = sshll.u32 %s2195_s15, 5 }
  0x3b   : > { %v1385_v3 = vsel %vm1383_vm1, %v1384_v2, 0  ;;  %s2853_s6 = scalar_lea.vmem [#allocation2], %s2203_s30  ;;  %p720_p8 = scmp.lt.s32.totalorder %s2204_s7, 63 }
  0x3c   : > { %v1387_v4 = vand.u32 %v2567_v0, %v1385_v3  ;;  %v2569_v6 = vld [vmem:[%s2853_s6] sm:$0xff]   ;;  %v2571_v8 = vld [vmem:[%s2853_s6 + $0x8] sm:$0xff]   ;;  %v2573_v10 = vld [vmem:[%s2853_s6 + $0x10] sm:$0xff]  }
  0x3d   : > { %v2570_v7 = vld [vmem:[%s2853_s6 + $0x100] sm:$0xff]   ;;  %2410 = vmatprep.mubr.msk.bf16.mxu0 %vm1189_vm2, %v2569_v6  ;;  %v2572_v9 = vld [vmem:[%s2853_s6 + $0x108] sm:$0xff]   ;;  %v2574_v11 = vld [vmem:[%s2853_s6 + $0x110] sm:$0xff]   ;;  %s3299_s7 = smov (!%p720_p8, %s2204_s7), 63 }
  0x3e   : > { %2406 = vmatprep.subr.bf16.mxu0 %v1387_v4  ;;  %2538 = vmatprep.subr.bf16.mxu1 %v1387_v4  ;;  %v2575_v12 = vld [vmem:[%s2853_s6 + $0x18] sm:$0xff]   ;;  %v2577_v14 = vld [vmem:[%s2853_s6 + $0x20] sm:$0xff]   ;;  %v2579_v16 = vld [vmem:[%s2853_s6 + $0x28] sm:$0xff]   ;;  %s2205_s10 = sshll.u32 %s3299_s7, 3 }
  0x3f   : > { %2407 = vmatpush3.bf16.msra.mxu0 %v1387_v4  ;;  %2540 = vmatpush3.bf16.msra.mxu1 %v1387_v4  ;;  %v2576_v13 = vld [vmem:[%s2853_s6 + $0x118] sm:$0xff]   ;;  %v2578_v15 = vld [vmem:[%s2853_s6 + $0x120] sm:$0xff]   ;;  %v2580_v17 = vld [vmem:[%s2853_s6 + $0x128] sm:$0xff]   ;;  %s3129_s14 = scalar_lea.vmem %s3264_s3, %s2205_s10 }
  0x40   : > { %2408 = vmatprep.subr.bf16.mxu0 %v2568_v5  ;;  %2539 = vmatprep.subr.bf16.mxu1 %v2568_v5  ;;  %v2581_v18 = vld [vmem:[%s2853_s6 + $0x30] sm:$0xff]   ;;  %v2583_v20 = vld [vmem:[%s2853_s6 + $0x38] sm:$0xff]   ;;  %v2585_v22 = vld [vmem:[%s2853_s6 + $0x40] sm:$0xff]  }
  0x41   : > { %2474 = vmatprep.mubr.msk.bf16.mxu1 %vm1189_vm2, %v2570_v7  ;;  %v2582_v19 = vld [vmem:[%s2853_s6 + $0x130] sm:$0xff]   ;;  %v2584_v21 = vld [vmem:[%s2853_s6 + $0x138] sm:$0xff]   ;;  %v2586_v23 = vld [vmem:[%s2853_s6 + $0x140] sm:$0xff]  }
  0x42   : > { %v2587_v24 = vld [vmem:[%s2853_s6 + $0x48] sm:$0xff]   ;;  %v2589_v26 = vld [vmem:[%s2853_s6 + $0x50] sm:$0xff]   ;;  %v2591_v28 = vld [vmem:[%s2853_s6 + $0x58] sm:$0xff]  }
  0x43   : > { %2409 = vmatpush3.bf16.msra.mxu0 %v2568_v5  ;;  %2541 = vmatpush3.bf16.msra.mxu1 %v2568_v5  ;;  %v2588_v25 = vld [vmem:[%s2853_s6 + $0x148] sm:$0xff]   ;;  %v2590_v27 = vld [vmem:[%s2853_s6 + $0x150] sm:$0xff]   ;;  %v2592_v29 = vld [vmem:[%s2853_s6 + $0x158] sm:$0xff]  }
  0x44   : > { %v2593_v30 = vld [vmem:[%s2853_s6 + $0x60] sm:$0xff]   ;;  %v2595_v32 = vld [vmem:[%s2853_s6 + $0x68] sm:$0xff]   ;;  %v2597_v34 = vld [vmem:[%s2853_s6 + $0x70] sm:$0xff]  }
  0x45   : > { %v2594_v31 = vld [vmem:[%s2853_s6 + $0x160] sm:$0xff]   ;;  %v2596_v33 = vld [vmem:[%s2853_s6 + $0x168] sm:$0xff]   ;;  %v2598_v35 = vld [vmem:[%s2853_s6 + $0x170] sm:$0xff]  }
  0x46   : > { %2411 = vmatmul.mubr.msk.bf16.vlgmr.msra.gmra.mxu0 %vm1189_vm2, %v2571_v8  ;;  %2475 = vmatmul.mubr.msk.bf16.vlgmr.msra.gmra.mxu1 %vm1189_vm2, %v2572_v9  ;;  %v2599_v36 = vld [vmem:[%s2853_s6 + $0x78] sm:$0xff]   ;;  %v2601_v38 = vld [vmem:[%s2853_s6 + $0x80] sm:$0xff]   ;;  %v2603_v40 = vld [vmem:[%s2853_s6 + $0x88] sm:$0xff]  }
  0x47   : > { %2414 = vmatprep.mubr.msk.bf16.mxu0 %vm1189_vm2, %v2573_v10  ;;  %2478 = vmatprep.mubr.msk.bf16.mxu1 %vm1189_vm2, %v2574_v11  ;;  %v2600_v37 = vld [vmem:[%s2853_s6 + $0x178] sm:$0xff]   ;;  %v2602_v39 = vld [vmem:[%s2853_s6 + $0x180] sm:$0xff]   ;;  %v2604_v41 = vld [vmem:[%s2853_s6 + $0x188] sm:$0xff]  }
  0x48   : > { %v2605_v42 = vld [vmem:[%s2853_s6 + $0x90] sm:$0xff]   ;;  %v2607_v44 = vld [vmem:[%s2853_s6 + $0x98] sm:$0xff]   ;;  %v2609_v46 = vld [vmem:[%s2853_s6 + $0xa0] sm:$0xff]  }
  0x49   : > { %v2606_v43 = vld [vmem:[%s2853_s6 + $0x190] sm:$0xff]   ;;  %v2608_v45 = vld [vmem:[%s2853_s6 + $0x198] sm:$0xff]   ;;  %v2610_v47 = vld [vmem:[%s2853_s6 + $0x1a0] sm:$0xff]  }
  0x4a   : > { %v2611_v48 = vld [vmem:[%s2853_s6 + $0xa8] sm:$0xff]   ;;  %v2613_v50 = vld [vmem:[%s2853_s6 + $0xb0] sm:$0xff]   ;;  %v2615_v52 = vld [vmem:[%s2853_s6 + $0xb8] sm:$0xff]  }
  0x4b   : > { %v2612_v49 = vld [vmem:[%s2853_s6 + $0x1a8] sm:$0xff]   ;;  %v2614_v51 = vld [vmem:[%s2853_s6 + $0x1b0] sm:$0xff]   ;;  %v2616_v53 = vld [vmem:[%s2853_s6 + $0x1b8] sm:$0xff]  }
  0x4c   : > { %v2617_v54 = vld [vmem:[%s2853_s6 + $0xc0] sm:$0xff]   ;;  %v2619_v56 = vld [vmem:[%s2853_s6 + $0xc8] sm:$0xff]   ;;  %v2621_v58 = vld [vmem:[%s2853_s6 + $0xd0] sm:$0xff]  }
  0x4d   : > { %v2618_v55 = vld [vmem:[%s2853_s6 + $0x1c0] sm:$0xff]   ;;  %v2620_v57 = vld [vmem:[%s2853_s6 + $0x1c8] sm:$0xff]   ;;  %v2622_v59 = vld [vmem:[%s2853_s6 + $0x1d0] sm:$0xff]  }
  0x4e   : > { %2415 = vmatmul.mubr.msk.bf16.gmra.mxu0 %vm1189_vm2, %v2575_v12  ;;  %2479 = vmatmul.mubr.msk.bf16.gmra.mxu1 %vm1189_vm2, %v2576_v13  ;;  %v2623_v60 = vld [vmem:[%s2853_s6 + $0xd8] sm:$0xff]   ;;  %v2625_v62 = vld [vmem:[%s2853_s6 + $0xe0] sm:$0xff]   ;;  %v2627_v0 = vld [vmem:[%s2853_s6 + $0xe8] sm:$0xff]  }
  0x4f   : > { %2418 = vmatprep.mubr.msk.bf16.mxu0 %vm1189_vm2, %v2577_v14  ;;  %2482 = vmatprep.mubr.msk.bf16.mxu1 %vm1189_vm2, %v2578_v15  ;;  %v2624_v61 = vld [vmem:[%s2853_s6 + $0x1d8] sm:$0xff]   ;;  %v2626_v63 = vld [vmem:[%s2853_s6 + $0x1e0] sm:$0xff]   ;;  %v2628_v1 = vld [vmem:[%s2853_s6 + $0x1e8] sm:$0xff]  }
  0x50   : > { %v2629_v2 = vld [vmem:[%s2853_s6 + $0xf0] sm:$0xff]   ;;  %v2631_v4 = vld [vmem:[%s2853_s6 + $0xf8] sm:$0xff]  }
  0x51   : > { %v2630_v3 = vld [vmem:[%s2853_s6 + $0x1f0] sm:$0xff]   ;;  %v2632_v5 = vld [vmem:[%s2853_s6 + $0x1f8] sm:$0xff]  }
  0x56   : > { %2419 = vmatmul.mubr.msk.bf16.gmra.mxu0 %vm1189_vm2, %v2579_v16  ;;  %2483 = vmatmul.mubr.msk.bf16.gmra.mxu1 %vm1189_vm2, %v2580_v17 }
  0x57   : > { %2422 = vmatprep.mubr.msk.bf16.mxu0 %vm1189_vm2, %v2581_v18  ;;  %2486 = vmatprep.mubr.msk.bf16.mxu1 %vm1189_vm2, %v2582_v19 }
  0x5e   : > { %2423 = vmatmul.mubr.msk.bf16.gmra.mxu0 %vm1189_vm2, %v2583_v20  ;;  %2487 = vmatmul.mubr.msk.bf16.gmra.mxu1 %vm1189_vm2, %v2584_v21 }
  0x5f   : > { %2426 = vmatprep.mubr.msk.bf16.mxu0 %vm1189_vm2, %v2585_v22  ;;  %2490 = vmatprep.mubr.msk.bf16.mxu1 %vm1189_vm2, %v2586_v23 }
  0x66   : > { %2427 = vmatmul.mubr.msk.bf16.gmra.mxu0 %vm1189_vm2, %v2587_v24  ;;  %2491 = vmatmul.mubr.msk.bf16.gmra.mxu1 %vm1189_vm2, %v2588_v25 }
  0x67   : > { %2430 = vmatprep.mubr.msk.bf16.mxu0 %vm1189_vm2, %v2589_v26  ;;  %2494 = vmatprep.mubr.msk.bf16.mxu1 %vm1189_vm2, %v2590_v27 }
  0x6e   : > { %2431 = vmatmul.mubr.msk.bf16.gmra.mxu0 %vm1189_vm2, %v2591_v28  ;;  %2495 = vmatmul.mubr.msk.bf16.gmra.mxu1 %vm1189_vm2, %v2592_v29 }
  0x6f   : > { %2434 = vmatprep.mubr.msk.bf16.mxu0 %vm1189_vm2, %v2593_v30  ;;  %2498 = vmatprep.mubr.msk.bf16.mxu1 %vm1189_vm2, %v2594_v31 }
  0x76   : > { %2435 = vmatmul.mubr.msk.bf16.gmra.mxu0 %vm1189_vm2, %v2595_v32  ;;  %2499 = vmatmul.mubr.msk.bf16.gmra.mxu1 %vm1189_vm2, %v2596_v33 }
  0x77   : > { %2438 = vmatprep.mubr.msk.bf16.mxu0 %vm1189_vm2, %v2597_v34  ;;  %2502 = vmatprep.mubr.msk.bf16.mxu1 %vm1189_vm2, %v2598_v35 }
  0x7e   : > { %2439 = vmatmul.mubr.msk.bf16.gmra.mxu0 %vm1189_vm2, %v2599_v36  ;;  %2503 = vmatmul.mubr.msk.bf16.gmra.mxu1 %vm1189_vm2, %v2600_v37 }
  0x7f   : > { %2442 = vmatprep.mubr.msk.bf16.mxu0 %vm1189_vm2, %v2601_v38  ;;  %2506 = vmatprep.mubr.msk.bf16.mxu1 %vm1189_vm2, %v2602_v39 }
  0x86   : > { %2443 = vmatmul.mubr.msk.bf16.gmra.mxu0 %vm1189_vm2, %v2603_v40  ;;  %2507 = vmatmul.mubr.msk.bf16.gmra.mxu1 %vm1189_vm2, %v2604_v41 }
  0x87   : > { %2446 = vmatprep.mubr.msk.bf16.mxu0 %vm1189_vm2, %v2605_v42  ;;  %2510 = vmatprep.mubr.msk.bf16.mxu1 %vm1189_vm2, %v2606_v43 }
  0x8e   : > { %2447 = vmatmul.mubr.msk.bf16.gmra.mxu0 %vm1189_vm2, %v2607_v44  ;;  %2511 = vmatmul.mubr.msk.bf16.gmra.mxu1 %vm1189_vm2, %v2608_v45 }
  0x8f   : > { %2450 = vmatprep.mubr.msk.bf16.mxu0 %vm1189_vm2, %v2609_v46  ;;  %2514 = vmatprep.mubr.msk.bf16.mxu1 %vm1189_vm2, %v2610_v47 }
  0x96   : > { %2451 = vmatmul.mubr.msk.bf16.gmra.mxu0 %vm1189_vm2, %v2611_v48  ;;  %2515 = vmatmul.mubr.msk.bf16.gmra.mxu1 %vm1189_vm2, %v2612_v49 }
  0x97   : > { %2454 = vmatprep.mubr.msk.bf16.mxu0 %vm1189_vm2, %v2613_v50  ;;  %2518 = vmatprep.mubr.msk.bf16.mxu1 %vm1189_vm2, %v2614_v51 }
  0x9e   : > { %2455 = vmatmul.mubr.msk.bf16.gmra.mxu0 %vm1189_vm2, %v2615_v52  ;;  %2519 = vmatmul.mubr.msk.bf16.gmra.mxu1 %vm1189_vm2, %v2616_v53 }
  0x9f   : > { %2458 = vmatprep.mubr.msk.bf16.mxu0 %vm1189_vm2, %v2617_v54  ;;  %2522 = vmatprep.mubr.msk.bf16.mxu1 %vm1189_vm2, %v2618_v55 }
  0xa6   : > { %2459 = vmatmul.mubr.msk.bf16.gmra.mxu0 %vm1189_vm2, %v2619_v56  ;;  %2523 = vmatmul.mubr.msk.bf16.gmra.mxu1 %vm1189_vm2, %v2620_v57 }
  0xa7   : > { %2462 = vmatprep.mubr.msk.bf16.mxu0 %vm1189_vm2, %v2621_v58  ;;  %2526 = vmatprep.mubr.msk.bf16.mxu1 %vm1189_vm2, %v2622_v59 }
  0xae   : > { %2463 = vmatmul.mubr.msk.bf16.gmra.mxu0 %vm1189_vm2, %v2623_v60  ;;  %2527 = vmatmul.mubr.msk.bf16.gmra.mxu1 %vm1189_vm2, %v2624_v61 }
  0xaf   : > { %2466 = vmatprep.mubr.msk.bf16.mxu0 %vm1189_vm2, %v2625_v62  ;;  %2530 = vmatprep.mubr.msk.bf16.mxu1 %vm1189_vm2, %v2626_v63 }
  0xb6   : > { %2467 = vmatmul.mubr.msk.bf16.gmra.mxu0 %vm1189_vm2, %v2627_v0  ;;  %2531 = vmatmul.mubr.msk.bf16.gmra.mxu1 %vm1189_vm2, %v2628_v1 }
  0xb7   : > { %2470 = vmatprep.mubr.msk.bf16.mxu0 %vm1189_vm2, %v2629_v2  ;;  %2534 = vmatprep.mubr.msk.bf16.mxu1 %vm1189_vm2, %v2630_v3 }
  0xbe   : > { %2471 = vmatmul.mubr.msk.bf16.gmra.mxu0 %vm1189_vm2, %v2631_v4  ;;  %2535 = vmatmul.mubr.msk.bf16.gmra.mxu1 %vm1189_vm2, %v2632_v5 }
 0x106   : > { %v2983_v6 = vpop.f32.mrf.mxu0  ;;  %v2985_v7 = vpop.f32.mrf.mxu1 }
 0x108   : > { %v2987_v8 = vpop.f32.mrf.mxu0  ;;  %v2989_v9 = vpop.f32.mrf.mxu1 }
 0x10a   : > { %v2991_v10 = vpop.f32.mrf.mxu0  ;;  %v2993_v11 = vpop.f32.mrf.mxu1 }
 0x10c   : > { %v2995_v12 = vpop.f32.mrf.mxu0  ;;  %v2997_v13 = vpop.f32.mrf.mxu1 }
 0x10e   : > { %v2999_v14 = vpop.f32.mrf.mxu0  ;;  %v3001_v15 = vpop.f32.mrf.mxu1 }
 0x110   : > { %v3003_v16 = vpop.f32.mrf.mxu0  ;;  %v3005_v17 = vpop.f32.mrf.mxu1 }
 0x112   : > { %v3007_v18 = vpop.f32.mrf.mxu0  ;;  %v3009_v19 = vpop.f32.mrf.mxu1 }
 0x114   : > { %v3011_v20 = vpop.f32.mrf.mxu0  ;;  %v3013_v21 = vpop.f32.mrf.mxu1 }
 0x116   : > { %v3015_v22 = vpop.f32.mrf.mxu0  ;;  %v3017_v23 = vpop.f32.mrf.mxu1 }
 0x118   : > { %v3019_v24 = vpop.f32.mrf.mxu0  ;;  %v3021_v25 = vpop.f32.mrf.mxu1 }
 0x11a   : > { %v3023_v26 = vpop.f32.mrf.mxu0  ;;  %v3025_v27 = vpop.f32.mrf.mxu1 }
 0x11c   : > { %v3027_v28 = vpop.f32.mrf.mxu0  ;;  %v3029_v29 = vpop.f32.mrf.mxu1 }
 0x11e   : > { %v3031_v30 = vpop.f32.mrf.mxu0  ;;  %v3033_v31 = vpop.f32.mrf.mxu1 }
 0x120   : > { %v3035_v32 = vpop.f32.mrf.mxu0  ;;  %v3037_v33 = vpop.f32.mrf.mxu1 }
 0x122   : > { %v3039_v34 = vpop.f32.mrf.mxu0  ;;  %v3041_v35 = vpop.f32.mrf.mxu1 }
 0x124   : > { %v3043_v36 = vpop.f32.mrf.mxu0  ;;  %v3045_v37 = vpop.f32.mrf.mxu1 }
 0x126   : > { %v3047_v38 = vpop.f32.mrf.mxu0  ;;  %v3049_v39 = vpop.f32.mrf.mxu1 }
 0x128   : > { %v3051_v40 = vpop.f32.mrf.mxu0  ;;  %v3053_v41 = vpop.f32.mrf.mxu1 }
 0x12a   : > { %v3055_v42 = vpop.f32.mrf.mxu0  ;;  %v3057_v43 = vpop.f32.mrf.mxu1 }
 0x12c   : > { %v3059_v44 = vpop.f32.mrf.mxu0  ;;  %v3061_v45 = vpop.f32.mrf.mxu1 }
 0x12e   : > { %v3063_v46 = vpop.f32.mrf.mxu0  ;;  %v3065_v47 = vpop.f32.mrf.mxu1 }
 0x130   : > { %v3067_v48 = vpop.f32.mrf.mxu0  ;;  %v3069_v49 = vpop.f32.mrf.mxu1 }
 0x132   : > { %v3071_v50 = vpop.f32.mrf.mxu0  ;;  %v3073_v51 = vpop.f32.mrf.mxu1 }
 0x134   : > { %v3075_v52 = vpop.f32.mrf.mxu0  ;;  %v3077_v53 = vpop.f32.mrf.mxu1 }
 0x136   : > { %v3079_v54 = vpop.f32.mrf.mxu0  ;;  %v3081_v55 = vpop.f32.mrf.mxu1 }
 0x137   : > { %3265 = vst [vmem:[#allocation3_spill] sm:$0xff] %v3081_v55 }
 0x138   : > { %v3083_v56 = vpop.f32.mrf.mxu0  ;;  %v3085_v57 = vpop.f32.mrf.mxu1 }
 0x139   : > { %3266 = vst [vmem:[#allocation4_spill] sm:$0xff] %v3083_v56  ;;  %3267 = vst [vmem:[#allocation5_spill] sm:$0xff] %v3085_v57 }
 0x13a   : > { %v3087_v58 = vpop.f32.mrf.mxu0  ;;  %v3089_v59 = vpop.f32.mrf.mxu1 }
 0x13b   : > { %3268 = vst [vmem:[#allocation6_spill] sm:$0xff] %v3087_v58  ;;  %3269 = vst [vmem:[#allocation7_spill] sm:$0xff] %v3089_v59 }
 0x13c   : > { %v3091_v60 = vpop.f32.mrf.mxu0  ;;  %v3093_v61 = vpop.f32.mrf.mxu1 }
 0x13d   : > { %3270 = vst [vmem:[#allocation8_spill] sm:$0xff] %v3091_v60  ;;  %3271 = vst [vmem:[#allocation9_spill] sm:$0xff] %v3093_v61 }
 0x13e   : > { %v3095_v62 = vpop.f32.mrf.mxu0  ;;  %v3097_v63 = vpop.f32.mrf.mxu1 }
 0x13f   : > { %3272 = vst [vmem:[#allocation10_spill] sm:$0xff] %v3095_v62  ;;  %3273 = vst [vmem:[#allocation11_spill] sm:$0xff] %v3097_v63 }
 0x140   : > { %v3099_v0 = vpop.f32.mrf.mxu0  ;;  %v3101_v1 = vpop.f32.mrf.mxu1 }
 0x141   : > { %3274 = vst [vmem:[#allocation12_spill] sm:$0xff] %v3099_v0  ;;  %3275 = vst [vmem:[#allocation13_spill] sm:$0xff] %v3101_v1 }
 0x142   : > { %v3105_v2 = vpop.f32.mrf.mxu0  ;;  %v3107_v3 = vpop.f32.mrf.mxu1 }
 0x143   : > { %3276 = vst [vmem:[#allocation14_spill] sm:$0xff] %v3105_v2  ;;  %3277 = vst [vmem:[#allocation15_spill] sm:$0xff] %v3107_v3  ;;  %v3119_v3 = vld [vmem:[%s3263_s2] ss:$0 sm:$0xff] }
 0x144   : > { %v3109_v4 = vpop.f32.mrf.mxu0  ;;  %v3111_v5 = vpop.f32.mrf.mxu1 }
 0x145   : > { %3278 = vst [vmem:[#allocation16_spill] sm:$0xff] %v3109_v4  ;;  %3279 = vst [vmem:[#allocation17_spill] sm:$0xff] %v3111_v5 }
 0x146   : > { %v2444_v61 = vpop.f32.mrf.mxu0  ;;  %v2508_v60 = vpop.f32.mrf.mxu1 }
 0x147   : > { %v1940_v62 = vmax.f32 %v2983_v6, %v2444_v61 }
 0x148   : > { %v1551_v63 = vpop.f32.mrf.mxu0  ;;  %v1807_v0 = vpop.f32.mrf.mxu1 }
 0x149   : > { %v1941_v1 = vmax.f32 %v1940_v62, %v2985_v7  ;;  %v1934_v59 = vmax.f32 %v2987_v8, %v1551_v63 }
 0x14a   : > { %v2445_v2 = vpop.f32.mrf.mxu0  ;;  %v2509_v4 = vpop.f32.mrf.mxu1 }
 0x14b   : > { %v1942_v5 = vmax.f32 %v1941_v1, %v2508_v60  ;;  %v1935_v58 = vmax.f32 %v1934_v59, %v2989_v9  ;;  %v1943_v6 = vmax.f32 %v2991_v10, %v2445_v2 }
 0x14c   : > { %v1554_v61 = vpop.f32.mrf.mxu0  ;;  %v1810_v57 = vpop.f32.mrf.mxu1 }
 0x14d   : > { %v2039_v55 = vadd.f32 %v3119_v3, %v1942_v5  ;;  %v1936_v7 = vmax.f32 %v1935_v58, %v1807_v0  ;;  %v1944_v8 = vmax.f32 %v1943_v6, %v2993_v11  ;;  %v1937_v62 = vmax.f32 %v2995_v12, %v1554_v61 }
 0x14e   : > { %v2448_v60 = vpop.f32.mrf.mxu0  ;;  %v2512_v63 = vpop.f32.mrf.mxu1 }
 0x14f   : > { %v2071_v9 = vmax.f32 %v2039_v55, 0.0  ;;  %v2037_v10 = vadd.f32 %v3119_v3, %v1936_v7  ;;  %v1945_v59 = vmax.f32 %v1944_v8, %v2509_v4  ;;  %v1938_v1 = vmax.f32 %v1937_v62, %v2997_v13 }
 0x150   : > { %v1952_v58 = vmax.f32 %v2999_v14, %v2448_v60  ;;  %v1567_v11 = vpop.f32.mrf.mxu0  ;;  %v1823_v0 = vpop.f32.mrf.mxu1 }
 0x151   : > { %2103 = vst [vmem:[%s3129_s14 + $0x10] sm:$0xff] %v2071_v9  ;;  %v2069_v12 = vmax.f32 %v2037_v10, 0.0  ;;  %v2040_v2 = vadd.f32 %v3119_v3, %v1945_v59  ;;  %v1939_v5 = vmax.f32 %v1938_v1, %v1810_v57  ;;  %v1946_v6 = vmax.f32 %v3003_v16, %v1567_v11 }
 0x152   : > { %v1953_v61 = vmax.f32 %v1952_v58, %v3001_v15  ;;  %v2449_v55 = vpop.f32.mrf.mxu0  ;;  %v2513_v56 = vpop.f32.mrf.mxu1 }
 0x153   : > { %2101 = vst [vmem:[%s3129_s14] sm:$0xff] %v2069_v12  ;;  %v2072_v4 = vmax.f32 %v2040_v2, 0.0  ;;  %v2038_v13 = vadd.f32 %v3119_v3, %v1939_v5  ;;  %v1947_v14 = vmax.f32 %v1946_v6, %v3005_v17  ;;  %v1955_v7 = vmax.f32 %v3007_v18, %v2449_v55 }
 0x154   : > { %v1954_v8 = vmax.f32 %v1953_v61, %v2512_v63  ;;  %v1570_v62 = vpop.f32.mrf.mxu0  ;;  %v1826_v60 = vpop.f32.mrf.mxu1 }
 0x155   : > { %2104 = vst [vmem:[%s3129_s14 + $0x18] sm:$0xff] %v2072_v4  ;;  %v2070_v57 = vmax.f32 %v2038_v13, 0.0  ;;  %v1948_v9 = vmax.f32 %v1947_v14, %v1823_v0  ;;  %v1956_v16 = vmax.f32 %v1955_v7, %v3009_v19  ;;  %v1949_v15 = vmax.f32 %v3011_v20, %v1570_v62 }
 0x156   : > { %v2043_v10 = vadd.f32 %v3119_v3, %v1954_v8  ;;  %v2452_v59 = vpop.f32.mrf.mxu0  ;;  %v2516_v1 = vpop.f32.mrf.mxu1 }
 0x157   : > { %2102 = vst [vmem:[%s3129_s14 + $0x8] sm:$0xff] %v2070_v57  ;;  %v2041_v17 = vadd.f32 %v3119_v3, %v1948_v9  ;;  %v1957_v18 = vmax.f32 %v1956_v16, %v2513_v56  ;;  %v1950_v63 = vmax.f32 %v1949_v15, %v3013_v21  ;;  %v1964_v58 = vmax.f32 %v3015_v22, %v2452_v59 }
 0x158   : > { %v2075_v11 = vmax.f32 %v2043_v10, 0.0  ;;  %v1583_v0 = vpop.f32.mrf.mxu0  ;;  %v1839_v12 = vpop.f32.mrf.mxu1 }
 0x159   : > { %v2073_v19 = vmax.f32 %v2041_v17, 0.0  ;;  %v2044_v20 = vadd.f32 %v3119_v3, %v1957_v18  ;;  %v1951_v2 = vmax.f32 %v1950_v63, %v1826_v60  ;;  %v1965_v5 = vmax.f32 %v1964_v58, %v3017_v23 }
 0x15a   : > { %2107 = vst [vmem:[%s3129_s14 + $0x30] sm:$0xff] %v2075_v11  ;;  %v1958_v6 = vmax.f32 %v3019_v24, %v1583_v0  ;;  %v2453_v61 = vpop.f32.mrf.mxu0  ;;  %v2517_v55 = vpop.f32.mrf.mxu1 }
 0x15b   : > { %2105 = vst [vmem:[%s3129_s14 + $0x20] sm:$0xff] %v2073_v19  ;;  %v2076_v21 = vmax.f32 %v2044_v20, 0.0  ;;  %v2042_v22 = vadd.f32 %v3119_v3, %v1951_v2  ;;  %v1966_v56 = vmax.f32 %v1965_v5, %v2516_v1  ;;  %v1967_v4 = vmax.f32 %v3023_v26, %v2453_v61 }
 0x15c   : > { %v1959_v13 = vmax.f32 %v1958_v6, %v3021_v25  ;;  %v1586_v14 = vpop.f32.mrf.mxu0  ;;  %v1842_v7 = vpop.f32.mrf.mxu1 }
 0x15d   : > { %2108 = vst [vmem:[%s3129_s14 + $0x38] sm:$0xff] %v2076_v21  ;;  %v2074_v23 = vmax.f32 %v2042_v22, 0.0  ;;  %v2047_v8 = vadd.f32 %v3119_v3, %v1966_v56  ;;  %v1968_v24 = vmax.f32 %v1967_v4, %v3025_v27  ;;  %v1961_v62 = vmax.f32 %v3027_v28, %v1586_v14 }
 0x15e   : > { %v1960_v60 = vmax.f32 %v1959_v13, %v1839_v12  ;;  %v2456_v57 = vpop.f32.mrf.mxu0  ;;  %v2520_v9 = vpop.f32.mrf.mxu1 }
 0x15f   : > { %2106 = vst [vmem:[%s3129_s14 + $0x28] sm:$0xff] %v2074_v23  ;;  %v2079_v16 = vmax.f32 %v2047_v8, 0.0  ;;  %v1969_v15 = vmax.f32 %v1968_v24, %v2517_v55  ;;  %v1962_v26 = vmax.f32 %v1961_v62, %v3029_v29  ;;  %v1976_v25 = vmax.f32 %v3031_v30, %v2456_v57 }
 0x160   : > { %v2045_v10 = vadd.f32 %v3119_v3, %v1960_v60  ;;  %v1599_v59 = vpop.f32.mrf.mxu0  ;;  %v1855_v1 = vpop.f32.mrf.mxu1 }
 0x161   : > { %2111 = vst [vmem:[%s3129_s14 + $0x50] sm:$0xff] %v2079_v16  ;;  %v2048_v27 = vadd.f32 %v3119_v3, %v1969_v15  ;;  %v1963_v28 = vmax.f32 %v1962_v26, %v1842_v7  ;;  %v1977_v17 = vmax.f32 %v1976_v25, %v3033_v31  ;;  %v1970_v18 = vmax.f32 %v3035_v32, %v1599_v59 }
 0x162   : > { %v2077_v63 = vmax.f32 %v2045_v10, 0.0  ;;  %v2457_v58 = vpop.f32.mrf.mxu0  ;;  %v2521_v11 = vpop.f32.mrf.mxu1 }
 0x163   : > { %v2080_v29 = vmax.f32 %v2048_v27, 0.0  ;;  %v2046_v30 = vadd.f32 %v3119_v3, %v1963_v28  ;;  %v1978_v0 = vmax.f32 %v1977_v17, %v2520_v9  ;;  %v1971_v12 = vmax.f32 %v1970_v18, %v3037_v33 }
 0x164   : > { %2109 = vst [vmem:[%s3129_s14 + $0x40] sm:$0xff] %v2077_v63  ;;  %v1979_v19 = vmax.f32 %v3039_v34, %v2457_v58  ;;  %v1602_v20 = vpop.f32.mrf.mxu0  ;;  %v1858_v2 = vpop.f32.mrf.mxu1 }
 0x165   : > { %2112 = vst [vmem:[%s3129_s14 + $0x58] sm:$0xff] %v2080_v29  ;;  %v2078_v31 = vmax.f32 %v2046_v30, 0.0  ;;  %v2051_v32 = vadd.f32 %v3119_v3, %v1978_v0  ;;  %v1972_v5 = vmax.f32 %v1971_v12, %v1855_v1  ;;  %v1973_v6 = vmax.f32 %v3043_v36, %v1602_v20 }
 0x166   : > { %v1980_v61 = vmax.f32 %v1979_v19, %v3041_v35  ;;  %v2460_v55 = vpop.f32.mrf.mxu0  ;;  %v2524_v21 = vpop.f32.mrf.mxu1 }
 0x167   : > { %2110 = vst [vmem:[%s3129_s14 + $0x48] sm:$0xff] %v2078_v31  ;;  %v2083_v33 = vmax.f32 %v2051_v32, 0.0  ;;  %v2049_v22 = vadd.f32 %v3119_v3, %v1972_v5  ;;  %v1974_v34 = vmax.f32 %v1973_v6, %v3045_v37  ;;  %v1988_v56 = vmax.f32 %v3047_v38, %v2460_v55 }
 0x168   : > { %v1981_v4 = vmax.f32 %v1980_v61, %v2521_v11  ;;  %v1615_v13 = vpop.f32.mrf.mxu0  ;;  %v1871_v14 = vpop.f32.mrf.mxu1 }
 0x169   : > { %2115 = vst [vmem:[%s3129_s14 + $0x70] sm:$0xff] %v2083_v33  ;;  %v2081_v7 = vmax.f32 %v2049_v22, 0.0  ;;  %v1975_v23 = vmax.f32 %v1974_v34, %v1858_v2  ;;  %v1989_v36 = vmax.f32 %v1988_v56, %v3049_v39  ;;  %v1982_v35 = vmax.f32 %v3051_v40, %v1615_v13  ;;  %v3280_v13 = vld [vmem:[#allocation4_spill] sm:$0xff] }
 0x16a   : > { %v2052_v8 = vadd.f32 %v3119_v3, %v1981_v4  ;;  %v2461_v24 = vpop.f32.mrf.mxu0  ;;  %v2525_v62 = vpop.f32.mrf.mxu1 }
 0x16b   : > { %2113 = vst [vmem:[%s3129_s14 + $0x60] sm:$0xff] %v2081_v7  ;;  %v2050_v37 = vadd.f32 %v3119_v3, %v1975_v23  ;;  %v1990_v38 = vmax.f32 %v1989_v36, %v2524_v21  ;;  %v1983_v60 = vmax.f32 %v1982_v35, %v3053_v41  ;;  %v1991_v57 = vmax.f32 %v3055_v42, %v2461_v24  ;;  %v3281_v7 = vld [vmem:[#allocation3_spill] sm:$0xff] }
 0x16c   : > { %v2084_v9 = vmax.f32 %v2052_v8, 0.0  ;;  %v1618_v16 = vpop.f32.mrf.mxu0  ;;  %v1874_v15 = vpop.f32.mrf.mxu1 }
 0x16d   : > { %v2082_v39 = vmax.f32 %v2050_v37, 0.0  ;;  %v2055_v40 = vadd.f32 %v3119_v3, %v1990_v38  ;;  %v1984_v26 = vmax.f32 %v1983_v60, %v1871_v14  ;;  %v1992_v25 = vmax.f32 %v1991_v57, %v3057_v43 }
 0x16e   : > { %2116 = vst [vmem:[%s3129_s14 + $0x78] sm:$0xff] %v2084_v9  ;;  %v1985_v10 = vmax.f32 %v3059_v44, %v1618_v16  ;;  %v2464_v59 = vpop.f32.mrf.mxu0  ;;  %v2528_v1 = vpop.f32.mrf.mxu1 }
 0x16f   : > { %2114 = vst [vmem:[%s3129_s14 + $0x68] sm:$0xff] %v2082_v39  ;;  %v2087_v41 = vmax.f32 %v2055_v40, 0.0  ;;  %v2053_v42 = vadd.f32 %v3119_v3, %v1984_v26  ;;  %v1993_v27 = vmax.f32 %v1992_v25, %v2525_v62  ;;  %v2000_v28 = vmax.f32 %v3063_v46, %v2464_v59  ;;  %v3283_v62 = vld [vmem:[#allocation6_spill] sm:$0xff]  ;;  %v3285_v40 = vld [vmem:[#allocation8_spill] sm:$0xff] }
 0x170   : > { %v1986_v17 = vmax.f32 %v1985_v10, %v3061_v45  ;;  %v1631_v18 = vpop.f32.mrf.mxu0  ;;  %v1887_v63 = vpop.f32.mrf.mxu1 }
 0x171   : > { %2119 = vst [vmem:[%s3129_s14 + $0x90] sm:$0xff] %v2087_v41  ;;  %v2085_v43 = vmax.f32 %v2053_v42, 0.0  ;;  %v2056_v58 = vadd.f32 %v3119_v3, %v1993_v27  ;;  %v2001_v44 = vmax.f32 %v2000_v28, %v3065_v47  ;;  %v1994_v11 = vmax.f32 %v3067_v48, %v1631_v18  ;;  %v3286_v42 = vld [vmem:[#allocation9_spill] sm:$0xff]  ;;  %v3287_v28 = vld [vmem:[#allocation10_spill] sm:$0xff] }
 0x172   : > { %v1987_v29 = vmax.f32 %v1986_v17, %v1874_v15  ;;  %v2465_v30 = vpop.f32.mrf.mxu0  ;;  %v2529_v0 = vpop.f32.mrf.mxu1  ;;  %v3284_v15 = vld [vmem:[#allocation7_spill] sm:$0xff] }
 0x173   : > { %2117 = vst [vmem:[%s3129_s14 + $0x80] sm:$0xff] %v2085_v43  ;;  %v2088_v12 = vmax.f32 %v2056_v58, 0.0  ;;  %v2002_v19 = vmax.f32 %v2001_v44, %v2528_v1  ;;  %v1995_v46 = vmax.f32 %v1994_v11, %v3069_v49  ;;  %v2003_v45 = vmax.f32 %v3071_v50, %v2465_v30 }
 0x174   : > { %v2054_v20 = vadd.f32 %v3119_v3, %v1987_v29  ;;  %v1634_v2 = vpop.f32.mrf.mxu0  ;;  %v1890_v31 = vpop.f32.mrf.mxu1  ;;  %v3288_v29 = vld [vmem:[#allocation11_spill] sm:$0xff] }
 0x175   : > { %2120 = vst [vmem:[%s3129_s14 + $0x98] sm:$0xff] %v2088_v12  ;;  %v2059_v47 = vadd.f32 %v3119_v3, %v2002_v19  ;;  %v1996_v48 = vmax.f32 %v1995_v46, %v1887_v63  ;;  %v2004_v32 = vmax.f32 %v2003_v45, %v3073_v51  ;;  %v1997_v5 = vmax.f32 %v3075_v52, %v1634_v2  ;;  %v3290_v2 = vld [vmem:[#allocation14_spill] sm:$0xff] }
 0x176   : > { %v2086_v6 = vmax.f32 %v2054_v20, 0.0  ;;  %v2468_v61 = vpop.f32.mrf.mxu0  ;;  %v2532_v55 = vpop.f32.mrf.mxu1 }
 0x177   : > { %v2091_v49 = vmax.f32 %v2059_v47, 0.0  ;;  %v2057_v50 = vadd.f32 %v3119_v3, %v1996_v48  ;;  %v2005_v21 = vmax.f32 %v2004_v32, %v2529_v0  ;;  %v1998_v33 = vmax.f32 %v1997_v5, %v3077_v53  ;;  %v3289_v0 = vld [vmem:[#allocation12_spill] sm:$0xff]  ;;  %v3291_v47 = vld [vmem:[#allocation13_spill] sm:$0xff] }
 0x178   : > { %2118 = vst [vmem:[%s3129_s14 + $0x88] sm:$0xff] %v2086_v6  ;;  %v2012_v22 = vmax.f32 %v3079_v54, %v2468_v61  ;;  %v1647_v34 = vpop.f32.mrf.mxu0  ;;  %v1903_v56 = vpop.f32.mrf.mxu1  ;;  %v3282_v54 = vld [vmem:[#allocation5_spill] sm:$0xff] }
 0x179   : > { %2123 = vst [vmem:[%s3129_s14 + $0xb0] sm:$0xff] %v2091_v49  ;;  %v2089_v51 = vmax.f32 %v2057_v50, 0.0  ;;  %v2060_v52 = vadd.f32 %v3119_v3, %v2005_v21  ;;  %v1999_v4 = vmax.f32 %v1998_v33, %v1890_v31  ;;  %v2006_v14 = vmax.f32 %v3280_v13, %v1647_v34  ;;  %v3293_v50 = vld [vmem:[#allocation16_spill] sm:$0xff] }
 0x17a   : > { %v2013_v23 = vmax.f32 %v2012_v22, %v3281_v7  ;;  %v2469_v36 = vpop.f32.mrf.mxu0  ;;  %v2533_v35 = vpop.f32.mrf.mxu1 }
 0x17b   : > { %2121 = vst [vmem:[%s3129_s14 + $0xa0] sm:$0xff] %v2089_v51  ;;  %v2092_v53 = vmax.f32 %v2060_v52, 0.0  ;;  %v2058_v8 = vadd.f32 %v3119_v3, %v1999_v4  ;;  %v2007_v24 = vmax.f32 %v2006_v14, %v3282_v54  ;;  %v2015_v37 = vmax.f32 %v3283_v62, %v2469_v36 }
 0x17c   : > { %v2014_v38 = vmax.f32 %v2013_v23, %v2532_v55  ;;  %v1650_v60 = vpop.f32.mrf.mxu0  ;;  %v1906_v57 = vpop.f32.mrf.mxu1  ;;  %v3292_v55 = vld [vmem:[#allocation15_spill] sm:$0xff] }
 0x17d   : > { %2124 = vst [vmem:[%s3129_s14 + $0xb8] sm:$0xff] %v2092_v53  ;;  %v2090_v9 = vmax.f32 %v2058_v8, 0.0  ;;  %v2008_v16 = vmax.f32 %v2007_v24, %v1903_v56  ;;  %v2016_v39 = vmax.f32 %v2015_v37, %v3284_v15  ;;  %v2009_v26 = vmax.f32 %v3285_v40, %v1650_v60  ;;  %v3294_v56 = vld [vmem:[#allocation17_spill] sm:$0xff] }
 0x17e   : > { %v2063_v25 = vadd.f32 %v3119_v3, %v2014_v38  ;;  %v2472_v10 = vpop.f32.mrf.mxu0  ;;  %v2536_v59 = vpop.f32.mrf.mxu1 }
 0x17f   : > { %2122 = vst [vmem:[%s3129_s14 + $0xa8] sm:$0xff] %v2090_v9  ;;  %v2061_v1 = vadd.f32 %v3119_v3, %v2008_v16  ;;  %v2017_v41 = vmax.f32 %v2016_v39, %v2533_v35  ;;  %v2010_v27 = vmax.f32 %v2009_v26, %v3286_v42  ;;  %v2024_v17 = vmax.f32 %v3287_v28, %v2472_v10 }
 0x180   : > { %v2095_v18 = vmax.f32 %v2063_v25, 0.0  ;;  %v1663_v63 = vpop.f32.mrf.mxu0  ;;  %v1919_v43 = vpop.f32.mrf.mxu1 }
 0x181   : > { %v2093_v58 = vmax.f32 %v2061_v1, 0.0  ;;  %v2064_v44 = vadd.f32 %v3119_v3, %v2017_v41  ;;  %v2011_v11 = vmax.f32 %v2010_v27, %v1906_v57  ;;  %v2025_v30 = vmax.f32 %v2024_v17, %v3288_v29 }
 0x182   : > { %2127 = vst [vmem:[%s3129_s14 + $0xd0] sm:$0xff] %v2095_v18  ;;  %v2018_v12 = vmax.f32 %v3289_v0, %v1663_v63  ;;  %v2473_v19 = vpop.f32.mrf.mxu0  ;;  %v2537_v32 = vpop.f32.mrf.mxu1 }
 0x183   : > { %2125 = vst [vmem:[%s3129_s14 + $0xc0] sm:$0xff] %v2093_v58  ;;  %v2096_v46 = vmax.f32 %v2064_v44, 0.0  ;;  %v2062_v45 = vadd.f32 %v3119_v3, %v2011_v11  ;;  %v2026_v20 = vmax.f32 %v2025_v30, %v2536_v59  ;;  %v2027_v31 = vmax.f32 %v3290_v2, %v2473_v19 }
 0x184   : > { %v2019_v48 = vmax.f32 %v2018_v12, %v3291_v47  ;;  %v1666_v5 = vpop.f32.mrf.mxu0  ;;  %v1922_v4 = vpop.f32.mrf.mxu1 }
 0x185   : > { %2128 = vst [vmem:[%s3129_s14 + $0xd8] sm:$0xff] %v2096_v46  ;;  %v2094_v6 = vmax.f32 %v2062_v45, 0.0  ;;  %v2067_v61 = vadd.f32 %v3119_v3, %v2026_v20  ;;  %v2028_v49 = vmax.f32 %v2027_v31, %v3292_v55  ;;  %v2021_v21 = vmax.f32 %v3293_v50, %v1666_v5 }
 0x186   : > { %v2020_v33 = vmax.f32 %v2019_v48, %v1919_v43 }
 0x187   : > { %2126 = vst [vmem:[%s3129_s14 + $0xc8] sm:$0xff] %v2094_v6  ;;  %v2099_v22 = vmax.f32 %v2067_v61, 0.0  ;;  %v2029_v34 = vmax.f32 %v2028_v49, %v2537_v32  ;;  %v2022_v51 = vmax.f32 %v2021_v21, %v3294_v56 }
 0x188   : > { %v2065_v52 = vadd.f32 %v3119_v3, %v2020_v33 }
 0x189   : > { %2131 = vst [vmem:[%s3129_s14 + $0xf0] sm:$0xff] %v2099_v22  ;;  %v2068_v13 = vadd.f32 %v3119_v3, %v2029_v34  ;;  %v2023_v14 = vmax.f32 %v2022_v51, %v1922_v4 }
 0x18a   : > { %v2097_v7 = vmax.f32 %v2065_v52, 0.0 }
 0x18b   : > { %v2100_v23 = vmax.f32 %v2068_v13, 0.0  ;;  %v2066_v36 = vadd.f32 %v3119_v3, %v2023_v14 }
 0x18c   : > { %2129 = vst [vmem:[%s3129_s14 + $0xe0] sm:$0xff] %v2097_v7 }
 0x18d   : > { %2132 = vst [vmem:[%s3129_s14 + $0xf8] sm:$0xff] %v2100_v23  ;;  %v2098_v35 = vmax.f32 %v2066_v36, 0.0 }
 0x18f   : > { %2130 = vst [vmem:[%s3129_s14 + $0xe8] sm:$0xff] %v2098_v35 }
 0x190 PF: > { %p10_p9 = scmp.ge.s32.totalorder %s2695_s16, 4   ;;  %s3295_s12 = smov %s2651_s13 }
 0x191   : > { %s3296_s13 = smov %s2704_s19  ;;  %s3297_s14 = smov %s2695_s16 }
 0x192   :  { %12 = sbr.rel (!%p10_p9) target bundleno = 2 (0x2), region = 108 }

// kernel: pseudo_lenet_forward.4
= control target key start
LH: loop header
LB: loop body
LE: loop exit
PB: predicated region body
PF: predicated region fallthrough
CT: control target
= control target key end

     0   :  { %v616_v0 = vmov 0   ;;  %vm245_vm0 = vcmask 179200   ;;  %vm288_vm1 = vcmask 1042432   ;;  %s810_s1 = inlined_call_operand.vmem [shape: bf16[150,128], index: 1, kind: input, shape index: {}]   ;;  %s811_s0 = inlined_call_operand.vmem [shape: bf16[4,56,150], index: 0, kind: input, shape index: {}]   ;;  %s812_s2 = inlined_call_operand.vmem [shape: f32[1,128], index: 2, kind: input, shape index: {}]   ;;  %s813_s3 = inlined_call_operand.vmem [shape: f32[56,128], index: 3, kind: output, shape index: {}]  }
   0x1   :  { %292 = vmatprep.subr.bf16.mxu0 %v616_v0  ;;  %543 = vmatprep.subr.bf16.mxu1 %v616_v0  ;;  %v564_v1 = vld [vmem:[%s810_s1 + $0x38] sm:$0xff]   ;;  %v565_v2 = vld [vmem:[%s810_s1 + $0x30] sm:$0xff]   ;;  %v566_v3 = vld [vmem:[%s810_s1 + $0x28] sm:$0xff]  }
   0x2   :  { %293 = vmatpush1.bf16.msra.mxu0 %v564_v1  ;;  %553 = vmatpush1.bf16.msra.mxu1 %v564_v1  ;;  %v567_v4 = vld [vmem:[%s810_s1 + $0x20] sm:$0xff]   ;;  %v579_v6 = vld [vmem:[%s811_s0 + $0x74] ss:$8 sps:$4 sm:$0xff]   ;;  %v570_v9 = vld [vmem:[%s810_s1 + $0x8] sm:$0xff]  }
   0x3   :  { %294 = vmatprep.subr.bf16.mxu0 %v616_v0  ;;  %544 = vmatprep.subr.bf16.mxu1 %v616_v0  ;;  %v576_v5 = vld [vmem:[%s811_s0 + $0x4] ss:$8 sps:$4 sm:$0xff]   ;;  %v568_v7 = vld [vmem:[%s810_s1 + $0x18] sm:$0xff]   ;;  %v569_v8 = vld [vmem:[%s810_s1 + $0x10] sm:$0xff]  }
   0x4   :  { %528 = vmatprep.mubr.msk.bf16.mxu0 %vm245_vm0, %v576_v5  ;;  %535 = vmatprep.mubr.msk.bf16.mxu1 %vm245_vm0, %v579_v6  ;;  %v571_v10 = vld [vmem:[%s810_s1] sm:$0xff]   ;;  %v572_v11 = vld [vmem:[%s810_s1 + $0x48] ss:$0 sps:$4 sm:$0x77]   ;;  %v577_v15 = vld [vmem:[%s811_s0 + $0x70] ss:$8 sps:$4 sm:$0xff]  }
   0x5   :  { %v290_v12 = vsel %vm288_vm1, %v572_v11, 0  ;;  %v573_v13 = vld [vmem:[%s810_s1 + $0x40] sm:$0xff]   ;;  %v580_v16 = vld [vmem:[%s811_s0 + $0x14] ss:$8 sps:$4 sm:$0xff]   ;;  %v584_v18 = vld [vmem:[%s811_s0 + $0x10] ss:$8 sps:$4 sm:$0xff]  }
   0x6   :  { %295 = vmatpush1.bf16.msra.mxu0 %v565_v2  ;;  %554 = vmatpush1.bf16.msra.mxu1 %v565_v2  ;;  %v574_v14 = vld [vmem:[%s811_s0] ss:$8 sps:$4 sm:$0xff]   ;;  %v582_v17 = vld [vmem:[%s811_s0 + $0x84] ss:$8 sps:$4 sm:$0xff]   ;;  %v588_v21 = vld [vmem:[%s811_s0 + $0x94] ss:$8 sps:$4 sm:$0xff]  }
   0x7   :  { %296 = vmatprep.subr.bf16.mxu0 %v616_v0  ;;  %545 = vmatprep.subr.bf16.mxu1 %v616_v0  ;;  %v585_v19 = vld [vmem:[%s811_s0 + $0x80] ss:$8 sps:$4 sm:$0xff]   ;;  %v586_v20 = vld [vmem:[%s811_s0 + $0x24] ss:$8 sps:$4 sm:$0xff]   ;;  %v591_v23 = vld [vmem:[%s811_s0 + $0x90] ss:$8 sps:$4 sm:$0xff]  }
   0x8   :  { %v590_v22 = vld [vmem:[%s811_s0 + $0x20] ss:$8 sps:$4 sm:$0xff]   ;;  %v592_v24 = vld [vmem:[%s811_s0 + $0x34] ss:$8 sps:$4 sm:$0xff]   ;;  %v594_v25 = vld [vmem:[%s811_s0 + $0xa4] ss:$8 sps:$4 sm:$0xff]  }
   0x9   :  { %v596_v26 = vld [vmem:[%s811_s0 + $0x30] ss:$8 sps:$4 sm:$0xff]   ;;  %v597_v27 = vld [vmem:[%s811_s0 + $0xa0] ss:$8 sps:$4 sm:$0xff]   ;;  %v598_v28 = vld [vmem:[%s811_s0 + $0x44] ss:$8 sps:$4 sm:$0xff]  }
   0xa   :  { %297 = vmatpush1.bf16.msra.mxu0 %v566_v3  ;;  %555 = vmatpush1.bf16.msra.mxu1 %v566_v3  ;;  %v600_v29 = vld [vmem:[%s811_s0 + $0xb4] ss:$8 sps:$4 sm:$0xff]   ;;  %v602_v30 = vld [vmem:[%s811_s0 + $0x40] ss:$8 sps:$4 sm:$0xff]   ;;  %v603_v31 = vld [vmem:[%s811_s0 + $0xb0] ss:$8 sps:$4 sm:$0xff]  }
   0xb   :  { %298 = vmatprep.subr.bf16.mxu0 %v616_v0  ;;  %546 = vmatprep.subr.bf16.mxu1 %v616_v0  ;;  %v604_v32 = vld [vmem:[%s811_s0 + $0x54] ss:$8 sps:$4 sm:$0xff]   ;;  %v606_v33 = vld [vmem:[%s811_s0 + $0xc4] ss:$8 sps:$4 sm:$0xff]   ;;  %v608_v34 = vld [vmem:[%s811_s0 + $0x50] ss:$8 sps:$4 sm:$0xff]  }
   0xc   :  { %v609_v35 = vld [vmem:[%s811_s0 + $0xc0] ss:$8 sps:$4 sm:$0xff]   ;;  %v610_v36 = vld [vmem:[%s811_s0 + $0x64] ss:$8 sps:$4 sm:$0xff]   ;;  %v612_v37 = vld [vmem:[%s811_s0 + $0xd4] ss:$8 sps:$4 sm:$0xff]  }
   0xd   :  { %v614_v38 = vld [vmem:[%s811_s0 + $0x60] ss:$8 sps:$4 sm:$0xff]   ;;  %v615_v39 = vld [vmem:[%s811_s0 + $0xd0] ss:$8 sps:$4 sm:$0xff]  }
   0xe   :  { %299 = vmatpush1.bf16.msra.mxu0 %v567_v4  ;;  %556 = vmatpush1.bf16.msra.mxu1 %v567_v4 }
   0xf   :  { %300 = vmatprep.subr.bf16.mxu0 %v616_v0  ;;  %547 = vmatprep.subr.bf16.mxu1 %v616_v0 }
  0x12   :  { %301 = vmatpush1.bf16.msra.mxu0 %v568_v7  ;;  %557 = vmatpush1.bf16.msra.mxu1 %v568_v7 }
  0x13   :  { %302 = vmatprep.subr.bf16.mxu0 %v616_v0  ;;  %548 = vmatprep.subr.bf16.mxu1 %v616_v0 }
  0x16   :  { %303 = vmatpush1.bf16.msra.mxu0 %v569_v8  ;;  %558 = vmatpush1.bf16.msra.mxu1 %v569_v8 }
  0x17   :  { %304 = vmatprep.subr.bf16.mxu0 %v616_v0  ;;  %549 = vmatprep.subr.bf16.mxu1 %v616_v0 }
  0x1a   :  { %305 = vmatpush1.bf16.msra.mxu0 %v570_v9  ;;  %559 = vmatpush1.bf16.msra.mxu1 %v570_v9 }
  0x1b   :  { %306 = vmatprep.subr.bf16.mxu0 %v616_v0  ;;  %550 = vmatprep.subr.bf16.mxu1 %v616_v0 }
  0x1e   :  { %307 = vmatpush1.bf16.msra.mxu0 %v571_v10  ;;  %560 = vmatpush1.bf16.msra.mxu1 %v571_v10  ;;  %v776_v10 = vld [vmem:[%s812_s2] ss:$0 sm:$0xff] }
  0x1f   :  { %320 = vmatprep.subr.bf16.mxu0 %v616_v0  ;;  %551 = vmatprep.subr.bf16.mxu1 %v616_v0 }
  0x22   :  { %321 = vmatpush2.bf16.msra.mxu0 %v290_v12  ;;  %561 = vmatpush2.bf16.msra.mxu1 %v290_v12 }
  0x23   :  { %322 = vmatprep.subr.bf16.mxu0 %v616_v0  ;;  %552 = vmatprep.subr.bf16.mxu1 %v616_v0 }
  0x26   :  { %323 = vmatpush2.bf16.msra.mxu0 %v573_v13  ;;  %562 = vmatpush2.bf16.msra.mxu1 %v573_v13 }
  0x29   :  { %325 = vmatmul.mubr.bf16.vlgmr.msra.gmra.mxu0 %v574_v14  ;;  %381 = vmatmul.mubr.bf16.vlgmr.msra.gmra.mxu1 %v577_v15 }
  0x2a   :  { %529 = vmatprep.mubr.msk.bf16.mxu0 %vm245_vm0, %v580_v16  ;;  %536 = vmatprep.mubr.msk.bf16.mxu1 %vm245_vm0, %v582_v17 }
  0x31   :  { %333 = vmatmul.mubr.bf16.gmra.mxu0 %v584_v18  ;;  %389 = vmatmul.mubr.bf16.gmra.mxu1 %v585_v19 }
  0x32   :  { %530 = vmatprep.mubr.msk.bf16.mxu0 %vm245_vm0, %v586_v20  ;;  %537 = vmatprep.mubr.msk.bf16.mxu1 %vm245_vm0, %v588_v21 }
  0x39   :  { %341 = vmatmul.mubr.bf16.gmra.mxu0 %v590_v22  ;;  %397 = vmatmul.mubr.bf16.gmra.mxu1 %v591_v23 }
  0x3a   :  { %531 = vmatprep.mubr.msk.bf16.mxu0 %vm245_vm0, %v592_v24  ;;  %538 = vmatprep.mubr.msk.bf16.mxu1 %vm245_vm0, %v594_v25 }
  0x41   :  { %349 = vmatmul.mubr.bf16.gmra.mxu0 %v596_v26  ;;  %405 = vmatmul.mubr.bf16.gmra.mxu1 %v597_v27 }
  0x42   :  { %532 = vmatprep.mubr.msk.bf16.mxu0 %vm245_vm0, %v598_v28  ;;  %539 = vmatprep.mubr.msk.bf16.mxu1 %vm245_vm0, %v600_v29 }
  0x49   :  { %357 = vmatmul.mubr.bf16.gmra.mxu0 %v602_v30  ;;  %413 = vmatmul.mubr.bf16.gmra.mxu1 %v603_v31 }
  0x4a   :  { %533 = vmatprep.mubr.msk.bf16.mxu0 %vm245_vm0, %v604_v32  ;;  %540 = vmatprep.mubr.msk.bf16.mxu1 %vm245_vm0, %v606_v33 }
  0x51   :  { %365 = vmatmul.mubr.bf16.gmra.mxu0 %v608_v34  ;;  %421 = vmatmul.mubr.bf16.gmra.mxu1 %v609_v35 }
  0x52   :  { %534 = vmatprep.mubr.msk.bf16.mxu0 %vm245_vm0, %v610_v36  ;;  %541 = vmatprep.mubr.msk.bf16.mxu1 %vm245_vm0, %v612_v37 }
  0x59   :  { %373 = vmatmul.mubr.bf16.gmra.mxu0 %v614_v38  ;;  %429 = vmatmul.mubr.bf16.gmra.mxu1 %v615_v39 }
  0xe9   :  { %v326_v40 = vpop.f32.mrf.mxu0  ;;  %v382_v41 = vpop.f32.mrf.mxu1 }
  0xeb   :  { %v328_v42 = vpop.f32.mrf.mxu0  ;;  %v384_v43 = vpop.f32.mrf.mxu1 }
  0xed   :  { %v329_v44 = vpop.f32.mrf.mxu0  ;;  %v385_v45 = vpop.f32.mrf.mxu1 }
  0xef   :  { %v331_v46 = vpop.f32.mrf.mxu0  ;;  %v387_v47 = vpop.f32.mrf.mxu1 }
  0xf1   :  { %v334_v48 = vpop.f32.mrf.mxu0  ;;  %v390_v49 = vpop.f32.mrf.mxu1 }
  0xf3   :  { %v336_v50 = vpop.f32.mrf.mxu0  ;;  %v392_v51 = vpop.f32.mrf.mxu1 }
  0xf5   :  { %v337_v52 = vpop.f32.mrf.mxu0  ;;  %v393_v53 = vpop.f32.mrf.mxu1 }
  0xf7   :  { %v339_v54 = vpop.f32.mrf.mxu0  ;;  %v395_v55 = vpop.f32.mrf.mxu1 }
  0xf9   :  { %v342_v56 = vpop.f32.mrf.mxu0  ;;  %v398_v57 = vpop.f32.mrf.mxu1 }
  0xfb   :  { %v344_v58 = vpop.f32.mrf.mxu0  ;;  %v400_v59 = vpop.f32.mrf.mxu1 }
  0xfd   :  { %v765_v60 = vpop.f32.mrf.mxu0  ;;  %v767_v61 = vpop.f32.mrf.mxu1 }
  0xff   :  { %v347_v62 = vpop.f32.mrf.mxu0  ;;  %v403_v63 = vpop.f32.mrf.mxu1 }
 0x101   :  { %v769_v0 = vpop.f32.mrf.mxu0  ;;  %v771_v1 = vpop.f32.mrf.mxu1 }
 0x103   :  { %v352_v2 = vpop.f32.mrf.mxu0  ;;  %v408_v3 = vpop.f32.mrf.mxu1 }
 0x105   :  { %v353_v4 = vpop.f32.mrf.mxu0  ;;  %v409_v5 = vpop.f32.mrf.mxu1 }
 0x106   :  { %v437_v6 = vmax.f32 %v326_v40, %v353_v4 }
 0x107   :  { %v355_v7 = vpop.f32.mrf.mxu0  ;;  %v411_v8 = vpop.f32.mrf.mxu1 }
 0x108   :  { %v438_v9 = vmax.f32 %v437_v6, %v382_v41 }
 0x109   :  { %v358_v11 = vpop.f32.mrf.mxu0  ;;  %v414_v12 = vpop.f32.mrf.mxu1 }
 0x10a   :  { %v439_v13 = vmax.f32 %v438_v9, %v409_v5  ;;  %v440_v14 = vmax.f32 %v329_v44, %v358_v11 }
 0x10b   :  { %v360_v15 = vpop.f32.mrf.mxu0  ;;  %v416_v16 = vpop.f32.mrf.mxu1 }
 0x10c   :  { %v465_v17 = vadd.f32 %v776_v10, %v439_v13  ;;  %v441_v18 = vmax.f32 %v440_v14, %v385_v45 }
 0x10d   :  { %v361_v19 = vpop.f32.mrf.mxu0  ;;  %v417_v20 = vpop.f32.mrf.mxu1 }
 0x10e   :  { %v472_v21 = vmax.f32 %v465_v17, 0.0  ;;  %v442_v22 = vmax.f32 %v441_v18, %v414_v12  ;;  %v443_v23 = vmax.f32 %v334_v48, %v361_v19 }
 0x10f   :  { %v363_v24 = vpop.f32.mrf.mxu0  ;;  %v419_v25 = vpop.f32.mrf.mxu1 }
 0x110   :  { %479 = vst [vmem:[%s813_s3] sm:$0xff] %v472_v21  ;;  %v466_v26 = vadd.f32 %v776_v10, %v442_v22  ;;  %v444_v27 = vmax.f32 %v443_v23, %v390_v49 }
 0x111   :  { %v366_v28 = vpop.f32.mrf.mxu0  ;;  %v422_v29 = vpop.f32.mrf.mxu1 }
 0x112   :  { %v473_v30 = vmax.f32 %v466_v26, 0.0  ;;  %v445_v31 = vmax.f32 %v444_v27, %v417_v20  ;;  %v446_v32 = vmax.f32 %v337_v52, %v366_v28 }
 0x113   :  { %v368_v33 = vpop.f32.mrf.mxu0  ;;  %v424_v34 = vpop.f32.mrf.mxu1 }
 0x114   :  { %480 = vst [vmem:[%s813_s3 + $0x8] sm:$0xff] %v473_v30  ;;  %v467_v35 = vadd.f32 %v776_v10, %v445_v31  ;;  %v447_v36 = vmax.f32 %v446_v32, %v393_v53 }
 0x115   :  { %v369_v37 = vpop.f32.mrf.mxu0  ;;  %v425_v38 = vpop.f32.mrf.mxu1 }
 0x116   :  { %v474_v39 = vmax.f32 %v467_v35, 0.0  ;;  %v448_v40 = vmax.f32 %v447_v36, %v422_v29  ;;  %v449_v41 = vmax.f32 %v342_v56, %v369_v37 }
 0x117   :  { %v371_v42 = vpop.f32.mrf.mxu0  ;;  %v427_v43 = vpop.f32.mrf.mxu1 }
 0x118   :  { %481 = vst [vmem:[%s813_s3 + $0x10] sm:$0xff] %v474_v39  ;;  %v468_v44 = vadd.f32 %v776_v10, %v448_v40  ;;  %v450_v45 = vmax.f32 %v449_v41, %v398_v57 }
 0x119   :  { %v374_v46 = vpop.f32.mrf.mxu0  ;;  %v430_v47 = vpop.f32.mrf.mxu1 }
 0x11a   :  { %v475_v48 = vmax.f32 %v468_v44, 0.0  ;;  %v451_v49 = vmax.f32 %v450_v45, %v425_v38  ;;  %v452_v50 = vmax.f32 %v765_v60, %v374_v46 }
 0x11b   :  { %v376_v51 = vpop.f32.mrf.mxu0  ;;  %v432_v52 = vpop.f32.mrf.mxu1 }
 0x11c   :  { %482 = vst [vmem:[%s813_s3 + $0x18] sm:$0xff] %v475_v48  ;;  %v469_v53 = vadd.f32 %v776_v10, %v451_v49  ;;  %v453_v54 = vmax.f32 %v452_v50, %v767_v61 }
 0x11d   :  { %v377_v55 = vpop.f32.mrf.mxu0  ;;  %v433_v56 = vpop.f32.mrf.mxu1 }
 0x11e   :  { %v476_v58 = vmax.f32 %v469_v53, 0.0  ;;  %v454_v57 = vmax.f32 %v453_v54, %v430_v47  ;;  %v455_v59 = vmax.f32 %v769_v0, %v377_v55 }
 0x11f   :  { %v379_v62 = vpop.f32.mrf.mxu0  ;;  %v435_v63 = vpop.f32.mrf.mxu1 }
 0x120   :  { %483 = vst [vmem:[%s813_s3 + $0x20] sm:$0xff] %v476_v58  ;;  %v470_v60 = vadd.f32 %v776_v10, %v454_v57  ;;  %v456_v2 = vmax.f32 %v455_v59, %v771_v1 }
 0x122   :  { %v477_v3 = vmax.f32 %v470_v60, 0.0  ;;  %v457_v4 = vmax.f32 %v456_v2, %v433_v56 }
 0x124   :  { %484 = vst [vmem:[%s813_s3 + $0x28] sm:$0xff] %v477_v3  ;;  %v471_v61 = vadd.f32 %v776_v10, %v457_v4 }
 0x126   :  { %v478_v5 = vmax.f32 %v471_v61, 0.0 }
 0x128   :  { %485 = vst [vmem:[%s813_s3 + $0x30] sm:$0xff] %v478_v5 }

// kernel: pseudo_lenet_forward.5
= control target key start
LH: loop header
LB: loop body
LE: loop exit
PB: predicated region body
PF: predicated region fallthrough
CT: control target
= control target key end

     0   :  { %v842_v39 = vmov 0.0   ;;  %vm843_vm0 = vmmov 0   ;;  %s1064_s1 = inlined_call_operand.vmem [shape: bf16[512,128], index: 1, kind: input, shape index: {}]   ;;  %s1065_s0 = inlined_call_operand.vmem [shape: bf16[8,512], index: 0, kind: input, shape index: {}]   ;;  %s1066_s3 = inlined_call_operand.vmem [shape: bf16[128,128], index: 3, kind: input, shape index: {}]   ;;  %s1067_s5 = inlined_call_operand.vmem [shape: bf16[128,128], index: 5, kind: input, shape index: {}]   ;;  %s1068_s2 = inlined_call_operand.vmem [shape: f32[1,128], index: 2, kind: input, shape index: {}]   ;;  %s1069_s4 = inlined_call_operand.vmem [shape: f32[1,128], index: 4, kind: input, shape index: {}]   ;;  %s1070_s6 = inlined_call_operand.vmem [shape: f32[1,128], index: 6, kind: input, shape index: {}]   ;;  %s1071_s7 = inlined_call_operand.vmem [shape: f32[8,128], index: 7, kind: output, shape index: {}]  }
   0x1   :  { %v786_v0 = vld [vmem:[%s1064_s1 + $0x78] sm:$0xff]   ;;  %v790_v4 = vld [vmem:[%s1064_s1 + $0x70] sm:$0xff]   ;;  %v794_v8 = vld [vmem:[%s1064_s1 + $0x68] sm:$0xff]  }
   0x2   :  { %v787_v1 = vld [vmem:[%s1064_s1 + $0xf8] sm:$0xff]   ;;  %682 = vmatprep.subr.bf16.mxu0 %v786_v0  ;;  %v791_v5 = vld [vmem:[%s1064_s1 + $0xf0] sm:$0xff]   ;;  %v795_v9 = vld [vmem:[%s1064_s1 + $0xe8] sm:$0xff]  }
   0x3   :  { %v788_v2 = vld [vmem:[%s1064_s1 + $0x38] sm:$0xff]   ;;  %704 = vmatprep.subr.bf16.mxu1 %v787_v1  ;;  %v792_v6 = vld [vmem:[%s1064_s1 + $0x30] sm:$0xff]   ;;  %v796_v10 = vld [vmem:[%s1064_s1 + $0x28] sm:$0xff]  }
   0x4   :  { %v789_v3 = vld [vmem:[%s1064_s1 + $0xb8] sm:$0xff]   ;;  %683 = vmatpush3.bf16.msra.mxu0 %v788_v2  ;;  %v793_v7 = vld [vmem:[%s1064_s1 + $0xb0] sm:$0xff]   ;;  %v797_v11 = vld [vmem:[%s1064_s1 + $0xa8] sm:$0xff]  }
   0x5   :  { %705 = vmatpush3.bf16.msra.mxu1 %v789_v3  ;;  %684 = vmatprep.subr.bf16.mxu0 %v790_v4  ;;  %v798_v12 = vld [vmem:[%s1064_s1 + $0x60] sm:$0xff]   ;;  %v802_v16 = vld [vmem:[%s1064_s1 + $0x58] sm:$0xff]   ;;  %v806_v20 = vld [vmem:[%s1064_s1 + $0x50] sm:$0xff]  }
   0x6   :  { %706 = vmatprep.subr.bf16.mxu1 %v791_v5  ;;  %v799_v13 = vld [vmem:[%s1064_s1 + $0xe0] sm:$0xff]   ;;  %v803_v17 = vld [vmem:[%s1064_s1 + $0xd8] sm:$0xff]   ;;  %v807_v21 = vld [vmem:[%s1064_s1 + $0xd0] sm:$0xff]  }
   0x7   :  { %v800_v14 = vld [vmem:[%s1064_s1 + $0x20] sm:$0xff]   ;;  %v804_v18 = vld [vmem:[%s1064_s1 + $0x18] sm:$0xff]   ;;  %v808_v22 = vld [vmem:[%s1064_s1 + $0x10] sm:$0xff]  }
   0x8   :  { %685 = vmatpush3.bf16.msra.mxu0 %v792_v6  ;;  %v801_v15 = vld [vmem:[%s1064_s1 + $0xa0] sm:$0xff]   ;;  %v805_v19 = vld [vmem:[%s1064_s1 + $0x98] sm:$0xff]   ;;  %v809_v23 = vld [vmem:[%s1064_s1 + $0x90] sm:$0xff]  }
   0x9   :  { %707 = vmatpush3.bf16.msra.mxu1 %v793_v7  ;;  %686 = vmatprep.subr.bf16.mxu0 %v794_v8  ;;  %v810_v24 = vld [vmem:[%s1064_s1 + $0x48] sm:$0xff]   ;;  %v814_v28 = vld [vmem:[%s1064_s1 + $0x40] sm:$0xff]   ;;  %v822_v38 = vld [vmem:[%s1066_s3 + $0x38] sm:$0xff]  }
   0xa   :  { %708 = vmatprep.subr.bf16.mxu1 %v795_v9  ;;  %v811_v25 = vld [vmem:[%s1064_s1 + $0xc8] sm:$0xff]   ;;  %v815_v29 = vld [vmem:[%s1064_s1 + $0xc0] sm:$0xff]   ;;  %v823_v40 = vld [vmem:[%s1066_s3 + $0x30] sm:$0xff]  }
   0xb   :  { %v812_v26 = vld [vmem:[%s1064_s1 + $0x8] sm:$0xff]   ;;  %v816_v30 = vld [vmem:[%s1064_s1] sm:$0xff]   ;;  %v826_v43 = vld [vmem:[%s1066_s3 + $0x18] sm:$0xff]  }
   0xc   :  { %687 = vmatpush3.bf16.msra.mxu0 %v796_v10  ;;  %v813_v27 = vld [vmem:[%s1064_s1 + $0x88] sm:$0xff]   ;;  %v817_v31 = vld [vmem:[%s1064_s1 + $0x80] sm:$0xff]   ;;  %v827_v44 = vld [vmem:[%s1066_s3 + $0x10] sm:$0xff]  }
   0xd   :  { %709 = vmatpush3.bf16.msra.mxu1 %v797_v11  ;;  %688 = vmatprep.subr.bf16.mxu0 %v798_v12  ;;  %v27_v32 = vld [vmem:[%s1065_s0] sm:$0xff]  ;;  %v28_v33 = vld [vmem:[%s1065_s0 + $0x8] sm:$0xff]  ;;  %v830_v47 = vld [vmem:[%s1067_s5 + $0x38] sm:$0xff]  }
   0xe   :  { %710 = vmatprep.subr.bf16.mxu1 %v799_v13  ;;  %v628_v34 = vcombine.low %v27_v32, %v27_v32  ;;  %v629_v35 = vcombine.high %v27_v32, %v27_v32  ;;  %v630_v36 = vcombine.low %v28_v33, %v28_v33  ;;  %v631_v37 = vcombine.high %v28_v33, %v28_v33  ;;  %v824_v41 = vld [vmem:[%s1066_s3 + $0x28] sm:$0xff]   ;;  %v825_v42 = vld [vmem:[%s1066_s3 + $0x20] sm:$0xff]   ;;  %v831_v48 = vld [vmem:[%s1067_s5 + $0x30] sm:$0xff]  }
   0xf   :  { %v828_v45 = vld [vmem:[%s1066_s3 + $0x8] sm:$0xff]   ;;  %v829_v46 = vld [vmem:[%s1066_s3] sm:$0xff]   ;;  %v834_v51 = vld [vmem:[%s1067_s5 + $0x18] sm:$0xff]  }
  0x10   :  { %689 = vmatpush3.bf16.msra.mxu0 %v800_v14  ;;  %338 = vmatprep.mubr.bf16.mxu0 %v629_v35  ;;  %v832_v49 = vld [vmem:[%s1067_s5 + $0x28] sm:$0xff]   ;;  %v833_v50 = vld [vmem:[%s1067_s5 + $0x20] sm:$0xff]   ;;  %v835_v52 = vld [vmem:[%s1067_s5 + $0x10] sm:$0xff]  }
  0x11   :  { %711 = vmatpush3.bf16.msra.mxu1 %v801_v15  ;;  %690 = vmatprep.subr.bf16.mxu0 %v802_v16  ;;  %v627_v55 = vld [vmem:[%s1068_s2] ss:$0 sm:$0xff]  ;;  %v836_v4 = vld [vmem:[%s1067_s5 + $0x8] sm:$0xff]  }
  0x12   :  { %712 = vmatprep.subr.bf16.mxu1 %v803_v17  ;;  %378 = vmatprep.mubr.bf16.mxu1 %v631_v37  ;;  %v837_v5 = vld [vmem:[%s1067_s5] sm:$0xff]  }
  0x13   :  { %v664_v6 = vld [vmem:[%s1069_s4] ss:$0 sm:$0xff] }
  0x14   :  { %691 = vmatpush3.bf16.msra.mxu0 %v804_v18  ;;  %v673_v14 = vld [vmem:[%s1070_s6] ss:$0 sm:$0xff] }
  0x15   :  { %713 = vmatpush3.bf16.msra.mxu1 %v805_v19  ;;  %692 = vmatprep.subr.bf16.mxu0 %v806_v20 }
  0x16   :  { %714 = vmatprep.subr.bf16.mxu1 %v807_v21 }
  0x18   :  { %693 = vmatpush3.bf16.msra.mxu0 %v808_v22 }
  0x19   :  { %715 = vmatpush3.bf16.msra.mxu1 %v809_v23  ;;  %694 = vmatprep.subr.bf16.mxu0 %v810_v24 }
  0x1a   :  { %716 = vmatprep.subr.bf16.mxu1 %v811_v25 }
  0x1c   :  { %695 = vmatpush3.bf16.msra.mxu0 %v812_v26 }
  0x1d   :  { %717 = vmatpush3.bf16.msra.mxu1 %v813_v27  ;;  %696 = vmatprep.subr.bf16.mxu0 %v814_v28 }
  0x1e   :  { %718 = vmatprep.subr.bf16.mxu1 %v815_v29 }
  0x20   :  { %697 = vmatpush3.bf16.msra.mxu0 %v816_v30 }
  0x21   :  { %719 = vmatpush3.bf16.msra.mxu1 %v817_v31  ;;  %744 = vmatprep.subr.bf16.mxu0 %v842_v39 }
  0x22   :  { %764 = vmatprep.subr.bf16.mxu1 %v842_v39 }
  0x23   :  { %339 = vmatmul.mubr.bf16.vlgmr.msra.gmra.mxu0 %v628_v34 }
  0x24   :  { %379 = vmatmul.mubr.bf16.vlgmr.msra.gmra.mxu1 %v630_v36  ;;  %745 = vmatpush3.bf16.msra.mxu0 %v822_v38 }
  0x25   :  { %746 = vmatprep.subr.bf16.mxu0 %v842_v39  ;;  %760 = vmatprep.mubr.msk.bf16.mxu0 %vm843_vm0, %v842_v39 }
  0x26   :  { %780 = vmatprep.mubr.msk.bf16.mxu1 %vm843_vm0, %v842_v39  ;;  %765 = vmatpush3.bf16.msra.mxu1 %v830_v47 }
  0x27   :  { %766 = vmatprep.subr.bf16.mxu1 %v842_v39 }
  0x28   :  { %747 = vmatpush3.bf16.msra.mxu0 %v823_v40 }
  0x29   :  { %748 = vmatprep.subr.bf16.mxu0 %v842_v39 }
  0x2a   :  { %767 = vmatpush3.bf16.msra.mxu1 %v831_v48 }
  0x2b   :  { %768 = vmatprep.subr.bf16.mxu1 %v842_v39 }
  0x2c   :  { %749 = vmatpush3.bf16.msra.mxu0 %v824_v41 }
  0x2d   :  { %750 = vmatprep.subr.bf16.mxu0 %v842_v39 }
  0x2e   :  { %769 = vmatpush3.bf16.msra.mxu1 %v832_v49 }
  0x2f   :  { %770 = vmatprep.subr.bf16.mxu1 %v842_v39 }
  0x30   :  { %751 = vmatpush3.bf16.msra.mxu0 %v825_v42 }
  0x31   :  { %752 = vmatprep.subr.bf16.mxu0 %v842_v39 }
  0x32   :  { %771 = vmatpush3.bf16.msra.mxu1 %v833_v50 }
  0x33   :  { %772 = vmatprep.subr.bf16.mxu1 %v842_v39 }
  0x34   :  { %753 = vmatpush3.bf16.msra.mxu0 %v826_v43 }
  0x35   :  { %754 = vmatprep.subr.bf16.mxu0 %v842_v39 }
  0x36   :  { %773 = vmatpush3.bf16.msra.mxu1 %v834_v51 }
  0x37   :  { %774 = vmatprep.subr.bf16.mxu1 %v842_v39 }
  0x38   :  { %755 = vmatpush3.bf16.msra.mxu0 %v827_v44 }
  0x39   :  { %756 = vmatprep.subr.bf16.mxu0 %v842_v39 }
  0x3a   :  { %775 = vmatpush3.bf16.msra.mxu1 %v835_v52 }
  0x3b   :  { %776 = vmatprep.subr.bf16.mxu1 %v842_v39 }
  0x3c   :  { %757 = vmatpush3.bf16.msra.mxu0 %v828_v45 }
  0x3d   :  { %758 = vmatprep.subr.bf16.mxu0 %v842_v39 }
  0x3e   :  { %777 = vmatpush3.bf16.msra.mxu1 %v836_v4 }
  0x3f   :  { %778 = vmatprep.subr.bf16.mxu1 %v842_v39 }
  0x40   :  { %759 = vmatpush3.bf16.msra.mxu0 %v829_v46 }
  0x42   :  { %779 = vmatpush3.bf16.msra.mxu1 %v837_v5 }
  0xe3   :  { %v698_v53 = vpop.f32.mrf.mxu0 }
  0xe4   :  { %v720_v54 = vpop.f32.mrf.mxu1 }
  0xe5   :  { %v699_v56 = vpop.f32.mrf.mxu0 }
  0xe6   :  { %v721_v57 = vpop.f32.mrf.mxu1  ;;  %v700_v58 = vadd.f32 %v699_v56, %v698_v53 }
  0xe7   :  { %v701_v59 = vpop.f32.mrf.mxu0  ;;  %v722_v62 = vadd.f32 %v721_v57, %v720_v54 }
  0xe8   :  { %v723_v60 = vpop.f32.mrf.mxu1  ;;  %v341_v61 = vadd.f32 %v700_v58, %v627_v55 }
  0xe9   :  { %v702_v63 = vpop.f32.mrf.mxu0 }
  0xea   :  { %v724_v0 = vpop.f32.mrf.mxu1  ;;  %v381_v1 = vadd.f32 %v722_v62, %v341_v61 }
  0xec   :  { %v386_v2 = vmax.f32 %v381_v1, 0.0 }
  0xee   :  { %v387_v3 = vpack.c.bf16 %v386_v2, %v386_v2 }
  0xf0   :  { %761 = vmatmul.mubr.bf16.vlgmr.msra.gmra.mxu0 %v387_v3 }
 0x1b0   :  { %v493_v7 = vpop.f32.mrf.mxu0 }
 0x1b1   :  { %v494_v8 = vadd.f32 %v664_v6, %v493_v7 }
 0x1b2   :  { %v762_v9 = vpop.f32.mrf.mxu0 }
 0x1b3   :  { %v499_v10 = vmax.f32 %v494_v8, 0.0 }
 0x1b4   :  { %v496_v11 = vpop.f32.mrf.mxu0 }
 0x1b5   :  { %v500_v12 = vpack.c.bf16 %v499_v10, %v499_v10 }
 0x1b6   :  { %v763_v13 = vpop.f32.mrf.mxu0 }
 0x1b7   :  { %781 = vmatmul.mubr.bf16.vlgmr.msra.gmra.mxu1 %v500_v12 }
 0x277   :  { %v606_v15 = vpop.f32.mrf.mxu1 }
 0x278   :  { %v607_v16 = vadd.f32 %v673_v14, %v606_v15 }
 0x279   :  { %v782_v17 = vpop.f32.mrf.mxu1 }
 0x27a   :  { %612 = vmax.xlane.f32.xlu0 %v607_v16 }
 0x27b   :  { %v609_v18 = vpop.f32.mrf.mxu1 }
 0x27d   :  { %v783_v19 = vpop.f32.mrf.mxu1 }
 0x303   :  { %v613_v20 = vpop.xlane.xlu0 %612 }
 0x304   :  { %v614_v21 = vsub.f32 %v607_v16, %v613_v20 }
 0x306   :  { %v615_v22 = vmul.f32 1.442695, %v614_v21 }
 0x308   :  { %838 = vpow2.f32 %v615_v22 }
 0x315   :  { %v839_v23 = vpop.eup %838 }
 0x316   :  { %617 = vadd.xlane.f32.xlu0 %v839_v23 }
 0x39f   :  { %v618_v24 = vpop.xlane.xlu0 %617 }
 0x3a0   :  { %840 = vlog2.f32 %v618_v24 }
 0x3ad   :  { %v841_v25 = vpop.eup %840 }
 0x3ae   :  { %v620_v26 = vmul.f32 0.6931472, %v841_v25 }
 0x3b0   :  { %v621_v27 = vsub.f32 %v614_v21, %v620_v26 }
 0x3b2   :  { %622 = vst [vmem:[%s1071_s7] sm:$0xff] %v621_v27 }

</bundles_post_ra>
